<compile_context>
chip_gen: v7x
topology: tpu7x:2x2x1
jax: 0.10.0
libtpu: 0.0.40
codegen_flags: <defaults>
</compile_context>

<pallas_src>
import functools

import jax
import jax.numpy as jnp
from jax.experimental import pallas as pl
from jax.experimental.pallas import tpu as pltpu


# ----------------------------- model config ---------------------------------
INPUT_SIZE = 16
HIDDEN_SIZE = 32          # 4*H = 128 -> one gate tile is exactly one (8,128) vreg width
NUM_LAYERS = 3
OUTPUT_SIZE = 1
SEQ_LEN = 8
# Requests per grid step == M of every recurrent matmul.  8 matches the tiny demo; raise
# toward 128 (v5e) / 256 (v6e/v7x) when many concurrent sequences exist — per-push MXU
# latency is ~flat in M, so wider M is nearly free throughput.
REQ_BLOCK = 8

# MXU input dtype (f32 accumulation).  bf16 is native on v6e/v7x.
MXU_DTYPE = jnp.bfloat16

# ------------- packed weight-slab row offsets (see pack_params) -------------
_I, _H = INPUT_SIZE, HIDDEN_SIZE
_ROW_WIH0 = slice(0, _I)                      # (I , 4H) layer-0 input projection
_ROW_WHH0 = slice(_I, _I + _H)                # (H , 4H) layer-0 recurrent
_ROW_WF1 = slice(_I + _H, _I + 3 * _H)        # (2H, 4H) layer-1 fused [W_ih; W_hh]
_ROW_WF2 = slice(_I + 3 * _H, _I + 5 * _H)    # (2H, 4H) layer-2 fused [W_ih; W_hh]
_ROW_FC1 = slice(_I + 5 * _H, _I + 6 * _H)    # (H , 4H) fc1, lane-padded to 4H
_W_SLAB_ROWS = _I + 6 * _H                    # 208 rows x 128 lanes (bf16)


# ------------------------------- kernel --------------------------------------
def lstm_arbitrage_kernel(T, Rb, x_ref, w_ref, s_ref, out_ref, gx_ref):
    H = HIDDEN_SIZE

    # Hoisted scalar-slab rows (single vld each, live across the unrolled recurrence).
    b1 = s_ref[1:2, :]
    b2 = s_ref[2:3, :]
    post_mul = s_ref[6:7, :]      # 0.5 on i/f/o gate columns, 1.0 on g columns
    post_add = s_ref[7:8, :]      # 0.5 on i/f/o gate columns, 0.0 on g columns

    # Layer-0 input projection for ALL time steps as one batched MXU matmul (bias folded,
    # gate prescale folded into the weights host-side).  Stored to VMEM scratch so the
    # result vregs are not live across the unrolled recurrence (per-step re-load is ~free).
    gx_ref[...] = jnp.dot(x_ref[0], w_ref[_ROW_WIH0, :],
                          preferred_element_type=jnp.float32) + s_ref[0:1, :]

    def gates_to_state(g, c_prev):
        # Gate weights/biases were prescaled by 0.5 on the i/f/o columns host-side, so a
        # SINGLE full-(Rb,4H) tanh yields both gate nonlinearities:
        #   sigmoid(z) = 0.5*tanh(z/2) + 0.5   (exact identity; 0.5 scale exact in bf16)
        act = jnp.tanh(g) * post_mul + post_add
        i_g = act[:, 0 * H:1 * H]
        f_g = act[:, 1 * H:2 * H]
        g_g = act[:, 2 * H:3 * H]
        o_g = act[:, 3 * H:4 * H]
        c = f_g * c_prev + i_g * g_g
        h = o_g * jnp.tanh(c)
        return h, c

    def cell_l0(t, h_prev, c_prev):
        # Keep the add adjacent to the dot (v7x MRB can accumulate in place).
        g = jnp.dot(h_prev.astype(MXU_DTYPE), w_ref[_ROW_WHH0, :],
                    preferred_element_type=jnp.float32) + gx_ref[t * Rb:(t + 1) * Rb, :]
        return gates_to_state(g, c_prev)

    def cell_fused(h_below, h_prev, c_prev, w_rows, b):
        # One fused (Rb,2H)x(2H,4H) MXU push per cell: [h_below_t ; h_{t-1}] @ [W_ih; W_hh].
        lhs = jnp.concatenate([h_below, h_prev], axis=1).astype(MXU_DTYPE)
        g = jnp.dot(lhs, w_ref[w_rows, :], preferred_element_type=jnp.float32) + b
        return gates_to_state(g, c_prev)

    zeros = jnp.zeros((Rb, H), jnp.float32)
    h0, c0 = zeros, zeros
    h1, c1 = zeros, zeros
    h2, c2 = zeros, zeros

    # Wavefront over the layer/time diagonal (fully unrolled: T, L static).  Emitted
    # top-layer-first so each cell reads the PREVIOUS-diagonal h of the layer below
    # without snapshot copies.  Serial chain: T + L - 1 = 10 diagonal steps.
    for d in range(T + NUM_LAYERS - 1):
        if 2 <= d <= T + 1:                       # layer 2 at t = d-2
            h2, c2 = cell_fused(h1, h2, c2, _ROW_WF2, b2)
        if 1 <= d <= T:                           # layer 1 at t = d-1
            h1, c1 = cell_fused(h0, h1, c1, _ROW_WF1, b1)
        if d <= T - 1:                            # layer 0 at t = d
            h0, c0 = cell_l0(d, h0, c0)

    # Head: fc1 -> tanh -> fc2.  (LSTM inter-layer dropout and dropout1 are identity in
    # eval mode, hence omitted.)  fc1 is lane-padded to 4H=128 with zero columns, so the
    # padded hid lanes are tanh(0)=0 and vanish in the fc2 lane reduction below.
    hid = jnp.tanh(jnp.dot(h2.astype(MXU_DTYPE), w_ref[_ROW_FC1, :],
                           preferred_element_type=jnp.float32) + s_ref[3:4, :])
    # fc2 has N=1: VPU multiply + XLU lane reduction instead of an N=1 MXU push.
    fc2b = s_ref[5:6, :][:, :1]
    out = jnp.sum(hid * s_ref[4:5, :], axis=-1, keepdims=True) + fc2b
    out_ref[...] = out.astype(out_ref.dtype)


# ------------------------- parameter initialization --------------------------
def init_params(key, input_size=INPUT_SIZE, hidden=HIDDEN_SIZE,
                num_layers=NUM_LAYERS, output_size=OUTPUT_SIZE):
    """Deterministic init mirroring the module's __init__ (f32 master copy).
    weight_ih: xavier_uniform; weight_hh: orthogonal; all biases zero."""
    H = hidden
    params = {}
    keys = jax.random.split(key, num_layers * 2 + 2)
    k_idx = 0
    for layer in range(num_layers):
        in_dim = input_size if layer == 0 else H
        bound = (6.0 / (4 * H + in_dim)) ** 0.5
        w_ih = jax.random.uniform(keys[k_idx], (4 * H, in_dim), jnp.float32, -bound, bound)
        k_idx += 1
        a = jax.random.normal(keys[k_idx], (4 * H, H), jnp.float32)
        k_idx += 1
        q, r = jnp.linalg.qr(a)
        q = q * jnp.sign(jnp.diagonal(r))[None, :]
        params[f"wih{layer}"] = w_ih.T                              # (in_dim, 4H)
        params[f"whh{layer}"] = q.T                                 # (H, 4H)
        params[f"b{layer}"] = jnp.zeros((1, 4 * H), jnp.float32)    # b_ih + b_hh = 0
    b1 = (1.0 / H) ** 0.5
    params["fc1w"] = jax.random.uniform(keys[k_idx], (H, H // 2), jnp.float32, -b1, b1)
    k_idx += 1
    params["fc1b"] = jnp.zeros((1, H // 2), jnp.float32)
    b2 = (1.0 / (H // 2)) ** 0.5
    params["fc2w"] = jax.random.uniform(keys[k_idx], (H // 2, output_size),
                                        jnp.float32, -b2, b2)
    params["fc2b"] = jnp.zeros((1, output_size), jnp.float32)
    return params


def _gate_prescale(h=HIDDEN_SIZE):
    """0.5 on the i/f/o gate column blocks, 1.0 on the g block (PyTorch i,f,g,o order)."""
    pre = jnp.full((4 * h,), 0.5, jnp.float32)
    return pre.at[2 * h:3 * h].set(1.0)


def pack_params(params):
    """Pack all parameters into two VMEM slabs.  Call ONCE at load time (weights static).

    * i/f/o gate columns of the LSTM weights/biases are prescaled by 0.5 (exact) so the
      kernel evaluates all gates with one tanh pass: sigmoid(x) = 0.5*tanh(x/2) + 0.5.
    * Layers 1/2 are stored as fused [W_ih; W_hh] blocks for the wavefront's single
      per-cell matmul.  fc1 is lane-padded to 4H; fc2/biases/gate constants go in the
      f32 scalar slab.
    """
    H, H2 = HIDDEN_SIZE, HIDDEN_SIZE // 2
    pre = _gate_prescale(H)[None, :]                                 # (1, 4H)

    wih0 = params["wih0"] * pre
    whh0 = params["whh0"] * pre
    wf1 = jnp.concatenate([params["wih1"], params["whh1"]], axis=0) * pre
    wf2 = jnp.concatenate([params["wih2"], params["whh2"]], axis=0) * pre
    fc1w = jnp.zeros((H, 4 * H), jnp.float32).at[:, :H2].set(params["fc1w"])
    w_slab = jnp.concatenate([wih0, whh0, wf1, wf2, fc1w], axis=0).astype(MXU_DTYPE)
    assert w_slab.shape == (_W_SLAB_ROWS, 4 * H)

    post_add = jnp.full((4 * H,), 0.5, jnp.float32).at[2 * H:3 * H].set(0.0)
    s = jnp.zeros((8, 4 * H), jnp.float32)
    s = s.at[0, :].set(params["b0"][0] * pre[0])
    s = s.at[1, :].set(params["b1"][0] * pre[0])
    s = s.at[2, :].set(params["b2"][0] * pre[0])
    s = s.at[3, :H2].set(params["fc1b"][0])
    s = s.at[4, :H2].set(params["fc2w"][:, 0])
    s = s.at[5, 0].set(params["fc2b"][0, 0])
    s = s.at[6, :].set(_gate_prescale(H))        # post-tanh multiplier
    s = s.at[7, :].set(post_add)                 # post-tanh offset
    return w_slab, s


# ------------------------------- wrapper --------------------------------------
@jax.jit
def lstm_arbitrage_forward(x, w_slab, s_slab):
    """x: (num_requests, T, input_size) float32, batch_first like the PyTorch module."""
    N, T, I = x.shape
    Rb = REQ_BLOCK
    nb = pl.cdiv(N, Rb)
    Np = nb * Rb
    if Np != N:
        x = jnp.pad(x, ((0, Np - N), (0, 0), (0, 0)))
    # Per request-block: time-major and flattened to (T*Rb, I) so layer 0's input
    # projection is one contiguous batched matmul.
    xb = (x.reshape(nb, Rb, T, I).transpose(0, 2, 1, 3)
            .reshape(nb, T * Rb, I).astype(MXU_DTYPE))

    out = pl.pallas_call(
        functools.partial(lstm_arbitrage_kernel, T, Rb),
        out_shape=jax.ShapeDtypeStruct((Np, OUTPUT_SIZE), jnp.float32),
        grid=(nb,),
        in_specs=[
            pl.BlockSpec((1, T * Rb, I), lambda r: (r, 0, 0)),   # per-block activations
            pl.BlockSpec(w_slab.shape, lambda r: (0, 0)),        # weights: VMEM-resident
            pl.BlockSpec(s_slab.shape, lambda r: (0, 0)),        # biases / gate constants
        ],
        out_specs=pl.BlockSpec((REQ_BLOCK, OUTPUT_SIZE), lambda r: (r, 0)),
        scratch_shapes=[pltpu.VMEM((T * Rb, 4 * HIDDEN_SIZE), jnp.float32)],
        compiler_params=pltpu.CompilerParams(
            # Independent request blocks -> sharded across v7x's two TensorCores.
            dimension_semantics=("parallel",)),
    )(xb, w_slab, s_slab)
    return out[:N]


# ------------------------------ reference ------------------------------------
def reference_forward(x_btf, params, matmul_dtype=jnp.float32):
    """Pure-JAX reference. matmul_dtype=float32 reproduces PyTorch eval semantics;
    matmul_dtype=MXU_DTYPE mirrors the kernel's MXU input casts (f32 accumulation)."""
    def mm(a, b):
        return jnp.dot(a.astype(matmul_dtype), b.astype(matmul_dtype),
                       preferred_element_type=jnp.float32)

    B, T, _ = x_btf.shape
    H = HIDDEN_SIZE
    layer_in = x_btf
    h_last = None
    for layer in range(NUM_LAYERS):
        wih, whh, b = params[f"wih{layer}"], params[f"whh{layer}"], params[f"b{layer}"]
        h = jnp.zeros((B, H), jnp.float32)
        c = jnp.zeros((B, H), jnp.float32)
        outs = []
        for t in range(T):
            g = mm(layer_in[:, t, :], wih) + mm(h, whh) + b
            i_g = jax.nn.sigmoid(g[:, 0 * H:1 * H])
            f_g = jax.nn.sigmoid(g[:, 1 * H:2 * H])
            g_g = jnp.tanh(g[:, 2 * H:3 * H])
            o_g = jax.nn.sigmoid(g[:, 3 * H:4 * H])
            c = f_g * c + i_g * g_g
            h = o_g * jnp.tanh(c)
            outs.append(h)
        layer_in = jnp.stack(outs, axis=1)
        h_last = h
    hid = jnp.tanh(mm(h_last, params["fc1w"]) + params["fc1b"])
    return mm(hid, params["fc2w"]) + params["fc2b"]


if __name__ == "__main__":
    key = jax.random.PRNGKey(0)
    k_x, k_p = jax.random.split(key)
    # 16 sequences -> two REQ_BLOCK=8 grid blocks (exercises the parallel request grid).
    N = 16
    x = jax.random.normal(k_x, (N, SEQ_LEN, INPUT_SIZE), jnp.float32)
    params = init_params(k_p)
    w_slab, s_slab = pack_params(params)      # once, at load time

    out = jax.block_until_ready(lstm_arbitrage_forward(x, w_slab, s_slab))
    assert out.shape == (N, OUTPUT_SIZE)

    # Tight check vs. a reference using the same MXU input dtype: validates wavefront
    # recurrence / fused-gate / head logic (only accumulation order & the exact
    # sigmoid-as-tanh identity differ).
    ref_mxu = reference_forward(x, params, MXU_DTYPE)
    assert jnp.allclose(out, ref_mxu, atol=2e-3, rtol=2e-3), (out, ref_mxu)

    # Sanity check vs. exact f32 (PyTorch eval) semantics; slack covers the deliberate
    # bf16 MXU-input casts through the recurrence.
    ref_f32 = reference_forward(x, params, jnp.float32)
    assert jnp.allclose(out, ref_f32, atol=5e-2, rtol=5e-2), (out, ref_f32)

    print("KERNEL_OK")
</pallas_src>

<mosaic_0001>
module attributes {stable_mosaic.version = 11 : i64} {
  func.func @lstm_arbitrage_kernel(%arg0: i32, %arg1: memref<1x64x16xbf16, #tpu.memory_space<vmem>>, %arg2: memref<208x128xbf16, #tpu.memory_space<vmem>>, %arg3: memref<8x128xf32, #tpu.memory_space<vmem>>, %arg4: memref<8x1xf32, #tpu.memory_space<vmem>>, %arg5: memref<64x128xf32, #tpu.memory_space<vmem>>) attributes {dimension_semantics = [#tpu.dimension_semantics<parallel>], iteration_bounds = array<i64: 2>, scalar_prefetch = 0 : i64, scratch_operands = 1 : i64, tpu.core_type = #tpu.core_type<tc>, window_params = [{transform_indices = @transform_0, window_bounds = array<i64: 1, 64, 16>}, {pipeline_mode = #tpu.pipeline_mode<synchronous>, transform_indices = @transform_1, window_bounds = array<i64: 208, 128>}, {pipeline_mode = #tpu.pipeline_mode<synchronous>, transform_indices = @transform_2, window_bounds = array<i64: 8, 128>}, {transform_indices = @transform_3, window_bounds = array<i64: 8, 1>}]} {
    %c1 = arith.constant 1 : index
    %c0 = arith.constant 0 : index
    %0 = vector.load %arg3[%c1, %c0] : memref<8x128xf32, #tpu.memory_space<vmem>>, vector<1x128xf32>
    %c2 = arith.constant 2 : index
    %c0_0 = arith.constant 0 : index
    %1 = vector.load %arg3[%c2, %c0_0] : memref<8x128xf32, #tpu.memory_space<vmem>>, vector<1x128xf32>
    %c6 = arith.constant 6 : index
    %c0_1 = arith.constant 0 : index
    %2 = vector.load %arg3[%c6, %c0_1] : memref<8x128xf32, #tpu.memory_space<vmem>>, vector<1x128xf32>
    %c7 = arith.constant 7 : index
    %c0_2 = arith.constant 0 : index
    %3 = vector.load %arg3[%c7, %c0_2] : memref<8x128xf32, #tpu.memory_space<vmem>>, vector<1x128xf32>
    %c0_3 = arith.constant 0 : index
    %c0_4 = arith.constant 0 : index
    %c0_5 = arith.constant 0 : index
    %4 = vector.load %arg1[%c0_3, %c0_4, %c0_5] : memref<1x64x16xbf16, #tpu.memory_space<vmem>>, vector<1x64x16xbf16>
    %5 = vector.shape_cast %4 : vector<1x64x16xbf16> to vector<64x16xbf16>
    %c0_6 = arith.constant 0 : index
    %c0_7 = arith.constant 0 : index
    %6 = vector.load %arg2[%c0_6, %c0_7] : memref<208x128xbf16, #tpu.memory_space<vmem>>, vector<16x128xbf16>
    %cst = arith.constant dense<0.000000e+00> : vector<64x128xf32>
    %7 = tpu.matmul %5, %6, %cst {dimension_numbers = #tpu.dot_dimension_numbers<[1], [0], [0], [1], [0, 0, 1, 1], [], []>} : vector<64x16xbf16>, vector<16x128xbf16>, vector<64x128xf32> -> vector<64x128xf32>
    %c0_8 = arith.constant 0 : index
    %c0_9 = arith.constant 0 : index
    %8 = vector.load %arg3[%c0_8, %c0_9] : memref<8x128xf32, #tpu.memory_space<vmem>>, vector<1x128xf32>
    %9 = vector.broadcast %8 : vector<1x128xf32> to vector<64x128xf32>
    %10 = arith.addf %7, %9 : vector<64x128xf32>
    %c0_10 = arith.constant 0 : index
    %c0_11 = arith.constant 0 : index
    %11 = vector.load %arg5[%c0_10, %c0_11] : memref<64x128xf32, #tpu.memory_space<vmem>>, vector<64x128xf32>
    tpu.vector_store %arg5[%c0_10, %c0_11], %10 {strides = array<i32>} : memref<64x128xf32, #tpu.memory_space<vmem>>, vector<64x128xf32>,
    %cst_12 = arith.constant 0.000000e+00 : f32
    %12 = vector.broadcast %cst_12 : f32 to vector<8x32xf32>
    %13 = arith.truncf %12 : vector<8x32xf32> to vector<8x32xbf16>
    %c16 = arith.constant 16 : index
    %c0_13 = arith.constant 0 : index
    %14 = vector.load %arg2[%c16, %c0_13] : memref<208x128xbf16, #tpu.memory_space<vmem>>, vector<32x128xbf16>
    %cst_14 = arith.constant dense<0.000000e+00> : vector<8x128xf32>
    %15 = tpu.matmul %13, %14, %cst_14 {dimension_numbers = #tpu.dot_dimension_numbers<[1], [0], [0], [1], [0, 0, 1, 1], [], []>} : vector<8x32xbf16>, vector<32x128xbf16>, vector<8x128xf32> -> vector<8x128xf32>
    %c0_15 = arith.constant 0 : index
    %c0_16 = arith.constant 0 : index
    %16 = vector.load %arg5[%c0_15, %c0_16] : memref<64x128xf32, #tpu.memory_space<vmem>>, vector<8x128xf32>
    %17 = arith.addf %15, %16 : vector<8x128xf32>
    %18 = math.tanh %17 : vector<8x128xf32>
    %19 = vector.broadcast %2 : vector<1x128xf32> to vector<8x128xf32>
    %20 = arith.mulf %18, %19 : vector<8x128xf32>
    %21 = vector.broadcast %3 : vector<1x128xf32> to vector<8x128xf32>
    %22 = arith.addf %20, %21 : vector<8x128xf32>
    %23 = vector.extract_strided_slice %22 {offsets = [0, 0], sizes = [8, 32], strides = [1, 1]} : vector<8x128xf32> to vector<8x32xf32>
    %24 = vector.extract_strided_slice %22 {offsets = [0, 32], sizes = [8, 32], strides = [1, 1]} : vector<8x128xf32> to vector<8x32xf32>
    %25 = vector.extract_strided_slice %22 {offsets = [0, 64], sizes = [8, 32], strides = [1, 1]} : vector<8x128xf32> to vector<8x32xf32>
    %26 = vector.extract_strided_slice %22 {offsets = [0, 96], sizes = [8, 32], strides = [1, 1]} : vector<8x128xf32> to vector<8x32xf32>
    %27 = arith.mulf %24, %12 : vector<8x32xf32>
    %28 = arith.mulf %23, %25 : vector<8x32xf32>
    %29 = arith.addf %27, %28 : vector<8x32xf32>
    %30 = math.tanh %29 : vector<8x32xf32>
    %31 = arith.mulf %26, %30 : vector<8x32xf32>
    %32 = tpu.concatenate %31, %12 in 1 : vector<8x32xf32>, vector<8x32xf32> -> vector<8x64xf32>
    %33 = arith.truncf %32 : vector<8x64xf32> to vector<8x64xbf16>
    %c48 = arith.constant 48 : index
    %c0_17 = arith.constant 0 : index
    %34 = vector.load %arg2[%c48, %c0_17] : memref<208x128xbf16, #tpu.memory_space<vmem>>, vector<64x128xbf16>
    %cst_18 = arith.constant dense<0.000000e+00> : vector<8x128xf32>
    %35 = tpu.matmul %33, %34, %cst_18 {dimension_numbers = #tpu.dot_dimension_numbers<[1], [0], [0], [1], [0, 0, 1, 1], [], []>} : vector<8x64xbf16>, vector<64x128xbf16>, vector<8x128xf32> -> vector<8x128xf32>
    %36 = vector.broadcast %0 : vector<1x128xf32> to vector<8x128xf32>
    %37 = arith.addf %35, %36 : vector<8x128xf32>
    %38 = math.tanh %37 : vector<8x128xf32>
    %39 = vector.broadcast %2 : vector<1x128xf32> to vector<8x128xf32>
    %40 = arith.mulf %38, %39 : vector<8x128xf32>
    %41 = vector.broadcast %3 : vector<1x128xf32> to vector<8x128xf32>
    %42 = arith.addf %40, %41 : vector<8x128xf32>
    %43 = vector.extract_strided_slice %42 {offsets = [0, 0], sizes = [8, 32], strides = [1, 1]} : vector<8x128xf32> to vector<8x32xf32>
    %44 = vector.extract_strided_slice %42 {offsets = [0, 32], sizes = [8, 32], strides = [1, 1]} : vector<8x128xf32> to vector<8x32xf32>
    %45 = vector.extract_strided_slice %42 {offsets = [0, 64], sizes = [8, 32], strides = [1, 1]} : vector<8x128xf32> to vector<8x32xf32>
    %46 = vector.extract_strided_slice %42 {offsets = [0, 96], sizes = [8, 32], strides = [1, 1]} : vector<8x128xf32> to vector<8x32xf32>
    %47 = arith.mulf %44, %12 : vector<8x32xf32>
    %48 = arith.mulf %43, %45 : vector<8x32xf32>
    %49 = arith.addf %47, %48 : vector<8x32xf32>
    %50 = math.tanh %49 : vector<8x32xf32>
    %51 = arith.mulf %46, %50 : vector<8x32xf32>
    %52 = arith.truncf %31 : vector<8x32xf32> to vector<8x32xbf16>
    %c16_19 = arith.constant 16 : index
    %c0_20 = arith.constant 0 : index
    %53 = vector.load %arg2[%c16_19, %c0_20] : memref<208x128xbf16, #tpu.memory_space<vmem>>, vector<32x128xbf16>
    %cst_21 = arith.constant dense<0.000000e+00> : vector<8x128xf32>
    %54 = tpu.matmul %52, %53, %cst_21 {dimension_numbers = #tpu.dot_dimension_numbers<[1], [0], [0], [1], [0, 0, 1, 1], [], []>} : vector<8x32xbf16>, vector<32x128xbf16>, vector<8x128xf32> -> vector<8x128xf32>
    %c8 = arith.constant 8 : index
    %c0_22 = arith.constant 0 : index
    %55 = vector.load %arg5[%c8, %c0_22] : memref<64x128xf32, #tpu.memory_space<vmem>>, vector<8x128xf32>
    %56 = arith.addf %54, %55 : vector<8x128xf32>
    %57 = math.tanh %56 : vector<8x128xf32>
    %58 = vector.broadcast %2 : vector<1x128xf32> to vector<8x128xf32>
    %59 = arith.mulf %57, %58 : vector<8x128xf32>
    %60 = vector.broadcast %3 : vector<1x128xf32> to vector<8x128xf32>
    %61 = arith.addf %59, %60 : vector<8x128xf32>
    %62 = vector.extract_strided_slice %61 {offsets = [0, 0], sizes = [8, 32], strides = [1, 1]} : vector<8x128xf32> to vector<8x32xf32>
    %63 = vector.extract_strided_slice %61 {offsets = [0, 32], sizes = [8, 32], strides = [1, 1]} : vector<8x128xf32> to vector<8x32xf32>
    %64 = vector.extract_strided_slice %61 {offsets = [0, 64], sizes = [8, 32], strides = [1, 1]} : vector<8x128xf32> to vector<8x32xf32>
    %65 = vector.extract_strided_slice %61 {offsets = [0, 96], sizes = [8, 32], strides = [1, 1]} : vector<8x128xf32> to vector<8x32xf32>
    %66 = arith.mulf %63, %29 : vector<8x32xf32>
    %67 = arith.mulf %62, %64 : vector<8x32xf32>
    %68 = arith.addf %66, %67 : vector<8x32xf32>
    %69 = math.tanh %68 : vector<8x32xf32>
    %70 = arith.mulf %65, %69 : vector<8x32xf32>
    %71 = tpu.concatenate %51, %12 in 1 : vector<8x32xf32>, vector<8x32xf32> -> vector<8x64xf32>
    %72 = arith.truncf %71 : vector<8x64xf32> to vector<8x64xbf16>
    %c112 = arith.constant 112 : index
    %c0_23 = arith.constant 0 : index
    %73 = vector.load %arg2[%c112, %c0_23] : memref<208x128xbf16, #tpu.memory_space<vmem>>, vector<64x128xbf16>
    %cst_24 = arith.constant dense<0.000000e+00> : vector<8x128xf32>
    %74 = tpu.matmul %72, %73, %cst_24 {dimension_numbers = #tpu.dot_dimension_numbers<[1], [0], [0], [1], [0, 0, 1, 1], [], []>} : vector<8x64xbf16>, vector<64x128xbf16>, vector<8x128xf32> -> vector<8x128xf32>
    %75 = vector.broadcast %1 : vector<1x128xf32> to vector<8x128xf32>
    %76 = arith.addf %74, %75 : vector<8x128xf32>
    %77 = math.tanh %76 : vector<8x128xf32>
    %78 = vector.broadcast %2 : vector<1x128xf32> to vector<8x128xf32>
    %79 = arith.mulf %77, %78 : vector<8x128xf32>
    %80 = vector.broadcast %3 : vector<1x128xf32> to vector<8x128xf32>
    %81 = arith.addf %79, %80 : vector<8x128xf32>
    %82 = vector.extract_strided_slice %81 {offsets = [0, 0], sizes = [8, 32], strides = [1, 1]} : vector<8x128xf32> to vector<8x32xf32>
    %83 = vector.extract_strided_slice %81 {offsets = [0, 32], sizes = [8, 32], strides = [1, 1]} : vector<8x128xf32> to vector<8x32xf32>
    %84 = vector.extract_strided_slice %81 {offsets = [0, 64], sizes = [8, 32], strides = [1, 1]} : vector<8x128xf32> to vector<8x32xf32>
    %85 = vector.extract_strided_slice %81 {offsets = [0, 96], sizes = [8, 32], strides = [1, 1]} : vector<8x128xf32> to vector<8x32xf32>
    %86 = arith.mulf %83, %12 : vector<8x32xf32>
    %87 = arith.mulf %82, %84 : vector<8x32xf32>
    %88 = arith.addf %86, %87 : vector<8x32xf32>
    %89 = math.tanh %88 : vector<8x32xf32>
    %90 = arith.mulf %85, %89 : vector<8x32xf32>
    %91 = tpu.concatenate %70, %51 in 1 : vector<8x32xf32>, vector<8x32xf32> -> vector<8x64xf32>
    %92 = arith.truncf %91 : vector<8x64xf32> to vector<8x64xbf16>
    %c48_25 = arith.constant 48 : index
    %c0_26 = arith.constant 0 : index
    %93 = vector.load %arg2[%c48_25, %c0_26] : memref<208x128xbf16, #tpu.memory_space<vmem>>, vector<64x128xbf16>
    %cst_27 = arith.constant dense<0.000000e+00> : vector<8x128xf32>
    %94 = tpu.matmul %92, %93, %cst_27 {dimension_numbers = #tpu.dot_dimension_numbers<[1], [0], [0], [1], [0, 0, 1, 1], [], []>} : vector<8x64xbf16>, vector<64x128xbf16>, vector<8x128xf32> -> vector<8x128xf32>
    %95 = vector.broadcast %0 : vector<1x128xf32> to vector<8x128xf32>
    %96 = arith.addf %94, %95 : vector<8x128xf32>
    %97 = math.tanh %96 : vector<8x128xf32>
    %98 = vector.broadcast %2 : vector<1x128xf32> to vector<8x128xf32>
    %99 = arith.mulf %97, %98 : vector<8x128xf32>
    %100 = vector.broadcast %3 : vector<1x128xf32> to vector<8x128xf32>
    %101 = arith.addf %99, %100 : vector<8x128xf32>
    %102 = vector.extract_strided_slice %101 {offsets = [0, 0], sizes = [8, 32], strides = [1, 1]} : vector<8x128xf32> to vector<8x32xf32>
    %103 = vector.extract_strided_slice %101 {offsets = [0, 32], sizes = [8, 32], strides = [1, 1]} : vector<8x128xf32> to vector<8x32xf32>
    %104 = vector.extract_strided_slice %101 {offsets = [0, 64], sizes = [8, 32], strides = [1, 1]} : vector<8x128xf32> to vector<8x32xf32>
    %105 = vector.extract_strided_slice %101 {offsets = [0, 96], sizes = [8, 32], strides = [1, 1]} : vector<8x128xf32> to vector<8x32xf32>
    %106 = arith.mulf %103, %49 : vector<8x32xf32>
    %107 = arith.mulf %102, %104 : vector<8x32xf32>
    %108 = arith.addf %106, %107 : vector<8x32xf32>
    %109 = math.tanh %108 : vector<8x32xf32>
    %110 = arith.mulf %105, %109 : vector<8x32xf32>
    %111 = arith.truncf %70 : vector<8x32xf32> to vector<8x32xbf16>
    %c16_28 = arith.constant 16 : index
    %c0_29 = arith.constant 0 : index
    %112 = vector.load %arg2[%c16_28, %c0_29] : memref<208x128xbf16, #tpu.memory_space<vmem>>, vector<32x128xbf16>
    %cst_30 = arith.constant dense<0.000000e+00> : vector<8x128xf32>
    %113 = tpu.matmul %111, %112, %cst_30 {dimension_numbers = #tpu.dot_dimension_numbers<[1], [0], [0], [1], [0, 0, 1, 1], [], []>} : vector<8x32xbf16>, vector<32x128xbf16>, vector<8x128xf32> -> vector<8x128xf32>
    %c16_31 = arith.constant 16 : index
    %c0_32 = arith.constant 0 : index
    %114 = vector.load %arg5[%c16_31, %c0_32] : memref<64x128xf32, #tpu.memory_space<vmem>>, vector<8x128xf32>
    %115 = arith.addf %113, %114 : vector<8x128xf32>
    %116 = math.tanh %115 : vector<8x128xf32>
    %117 = vector.broadcast %2 : vector<1x128xf32> to vector<8x128xf32>
    %118 = arith.mulf %116, %117 : vector<8x128xf32>
    %119 = vector.broadcast %3 : vector<1x128xf32> to vector<8x128xf32>
    %120 = arith.addf %118, %119 : vector<8x128xf32>
    %121 = vector.extract_strided_slice %120 {offsets = [0, 0], sizes = [8, 32], strides = [1, 1]} : vector<8x128xf32> to vector<8x32xf32>
    %122 = vector.extract_strided_slice %120 {offsets = [0, 32], sizes = [8, 32], strides = [1, 1]} : vector<8x128xf32> to vector<8x32xf32>
    %123 = vector.extract_strided_slice %120 {offsets = [0, 64], sizes = [8, 32], strides = [1, 1]} : vector<8x128xf32> to vector<8x32xf32>
    %124 = vector.extract_strided_slice %120 {offsets = [0, 96], sizes = [8, 32], strides = [1, 1]} : vector<8x128xf32> to vector<8x32xf32>
    %125 = arith.mulf %122, %68 : vector<8x32xf32>
    %126 = arith.mulf %121, %123 : vector<8x32xf32>
    %127 = arith.addf %125, %126 : vector<8x32xf32>
    %128 = math.tanh %127 : vector<8x32xf32>
    %129 = arith.mulf %124, %128 : vector<8x32xf32>
    %130 = tpu.concatenate %110, %90 in 1 : vector<8x32xf32>, vector<8x32xf32> -> vector<8x64xf32>
    %131 = arith.truncf %130 : vector<8x64xf32> to vector<8x64xbf16>
    %c112_33 = arith.constant 112 : index
    %c0_34 = arith.constant 0 : index
    %132 = vector.load %arg2[%c112_33, %c0_34] : memref<208x128xbf16, #tpu.memory_space<vmem>>, vector<64x128xbf16>
    %cst_35 = arith.constant dense<0.000000e+00> : vector<8x128xf32>
    %133 = tpu.matmul %131, %132, %cst_35 {dimension_numbers = #tpu.dot_dimension_numbers<[1], [0], [0], [1], [0, 0, 1, 1], [], []>} : vector<8x64xbf16>, vector<64x128xbf16>, vector<8x128xf32> -> vector<8x128xf32>
    %134 = vector.broadcast %1 : vector<1x128xf32> to vector<8x128xf32>
    %135 = arith.addf %133, %134 : vector<8x128xf32>
    %136 = math.tanh %135 : vector<8x128xf32>
    %137 = vector.broadcast %2 : vector<1x128xf32> to vector<8x128xf32>
    %138 = arith.mulf %136, %137 : vector<8x128xf32>
    %139 = vector.broadcast %3 : vector<1x128xf32> to vector<8x128xf32>
    %140 = arith.addf %138, %139 : vector<8x128xf32>
    %141 = vector.extract_strided_slice %140 {offsets = [0, 0], sizes = [8, 32], strides = [1, 1]} : vector<8x128xf32> to vector<8x32xf32>
    %142 = vector.extract_strided_slice %140 {offsets = [0, 32], sizes = [8, 32], strides = [1, 1]} : vector<8x128xf32> to vector<8x32xf32>
    %143 = vector.extract_strided_slice %140 {offsets = [0, 64], sizes = [8, 32], strides = [1, 1]} : vector<8x128xf32> to vector<8x32xf32>
    %144 = vector.extract_strided_slice %140 {offsets = [0, 96], sizes = [8, 32], strides = [1, 1]} : vector<8x128xf32> to vector<8x32xf32>
    %145 = arith.mulf %142, %88 : vector<8x32xf32>
    %146 = arith.mulf %141, %143 : vector<8x32xf32>
    %147 = arith.addf %145, %146 : vector<8x32xf32>
    %148 = math.tanh %147 : vector<8x32xf32>
    %149 = arith.mulf %144, %148 : vector<8x32xf32>
    %150 = tpu.concatenate %129, %110 in 1 : vector<8x32xf32>, vector<8x32xf32> -> vector<8x64xf32>
    %151 = arith.truncf %150 : vector<8x64xf32> to vector<8x64xbf16>
    %c48_36 = arith.constant 48 : index
    %c0_37 = arith.constant 0 : index
    %152 = vector.load %arg2[%c48_36, %c0_37] : memref<208x128xbf16, #tpu.memory_space<vmem>>, vector<64x128xbf16>
    %cst_38 = arith.constant dense<0.000000e+00> : vector<8x128xf32>
    %153 = tpu.matmul %151, %152, %cst_38 {dimension_numbers = #tpu.dot_dimension_numbers<[1], [0], [0], [1], [0, 0, 1, 1], [], []>} : vector<8x64xbf16>, vector<64x128xbf16>, vector<8x128xf32> -> vector<8x128xf32>
    %154 = vector.broadcast %0 : vector<1x128xf32> to vector<8x128xf32>
    %155 = arith.addf %153, %154 : vector<8x128xf32>
    %156 = math.tanh %155 : vector<8x128xf32>
    %157 = vector.broadcast %2 : vector<1x128xf32> to vector<8x128xf32>
    %158 = arith.mulf %156, %157 : vector<8x128xf32>
    %159 = vector.broadcast %3 : vector<1x128xf32> to vector<8x128xf32>
    %160 = arith.addf %158, %159 : vector<8x128xf32>
    %161 = vector.extract_strided_slice %160 {offsets = [0, 0], sizes = [8, 32], strides = [1, 1]} : vector<8x128xf32> to vector<8x32xf32>
    %162 = vector.extract_strided_slice %160 {offsets = [0, 32], sizes = [8, 32], strides = [1, 1]} : vector<8x128xf32> to vector<8x32xf32>
    %163 = vector.extract_strided_slice %160 {offsets = [0, 64], sizes = [8, 32], strides = [1, 1]} : vector<8x128xf32> to vector<8x32xf32>
    %164 = vector.extract_strided_slice %160 {offsets = [0, 96], sizes = [8, 32], strides = [1, 1]} : vector<8x128xf32> to vector<8x32xf32>
    %165 = arith.mulf %162, %108 : vector<8x32xf32>
    %166 = arith.mulf %161, %163 : vector<8x32xf32>
    %167 = arith.addf %165, %166 : vector<8x32xf32>
    %168 = math.tanh %167 : vector<8x32xf32>
    %169 = arith.mulf %164, %168 : vector<8x32xf32>
    %170 = arith.truncf %129 : vector<8x32xf32> to vector<8x32xbf16>
    %c16_39 = arith.constant 16 : index
    %c0_40 = arith.constant 0 : index
    %171 = vector.load %arg2[%c16_39, %c0_40] : memref<208x128xbf16, #tpu.memory_space<vmem>>, vector<32x128xbf16>
    %cst_41 = arith.constant dense<0.000000e+00> : vector<8x128xf32>
    %172 = tpu.matmul %170, %171, %cst_41 {dimension_numbers = #tpu.dot_dimension_numbers<[1], [0], [0], [1], [0, 0, 1, 1], [], []>} : vector<8x32xbf16>, vector<32x128xbf16>, vector<8x128xf32> -> vector<8x128xf32>
    %c24 = arith.constant 24 : index
    %c0_42 = arith.constant 0 : index
    %173 = vector.load %arg5[%c24, %c0_42] : memref<64x128xf32, #tpu.memory_space<vmem>>, vector<8x128xf32>
    %174 = arith.addf %172, %173 : vector<8x128xf32>
    %175 = math.tanh %174 : vector<8x128xf32>
    %176 = vector.broadcast %2 : vector<1x128xf32> to vector<8x128xf32>
    %177 = arith.mulf %175, %176 : vector<8x128xf32>
    %178 = vector.broadcast %3 : vector<1x128xf32> to vector<8x128xf32>
    %179 = arith.addf %177, %178 : vector<8x128xf32>
    %180 = vector.extract_strided_slice %179 {offsets = [0, 0], sizes = [8, 32], strides = [1, 1]} : vector<8x128xf32> to vector<8x32xf32>
    %181 = vector.extract_strided_slice %179 {offsets = [0, 32], sizes = [8, 32], strides = [1, 1]} : vector<8x128xf32> to vector<8x32xf32>
    %182 = vector.extract_strided_slice %179 {offsets = [0, 64], sizes = [8, 32], strides = [1, 1]} : vector<8x128xf32> to vector<8x32xf32>
    %183 = vector.extract_strided_slice %179 {offsets = [0, 96], sizes = [8, 32], strides = [1, 1]} : vector<8x128xf32> to vector<8x32xf32>
    %184 = arith.mulf %181, %127 : vector<8x32xf32>
    %185 = arith.mulf %180, %182 : vector<8x32xf32>
    %186 = arith.addf %184, %185 : vector<8x32xf32>
    %187 = math.tanh %186 : vector<8x32xf32>
    %188 = arith.mulf %183, %187 : vector<8x32xf32>
    %189 = tpu.concatenate %169, %149 in 1 : vector<8x32xf32>, vector<8x32xf32> -> vector<8x64xf32>
    %190 = arith.truncf %189 : vector<8x64xf32> to vector<8x64xbf16>
    %c112_43 = arith.constant 112 : index
    %c0_44 = arith.constant 0 : index
    %191 = vector.load %arg2[%c112_43, %c0_44] : memref<208x128xbf16, #tpu.memory_space<vmem>>, vector<64x128xbf16>
    %cst_45 = arith.constant dense<0.000000e+00> : vector<8x128xf32>
    %192 = tpu.matmul %190, %191, %cst_45 {dimension_numbers = #tpu.dot_dimension_numbers<[1], [0], [0], [1], [0, 0, 1, 1], [], []>} : vector<8x64xbf16>, vector<64x128xbf16>, vector<8x128xf32> -> vector<8x128xf32>
    %193 = vector.broadcast %1 : vector<1x128xf32> to vector<8x128xf32>
    %194 = arith.addf %192, %193 : vector<8x128xf32>
    %195 = math.tanh %194 : vector<8x128xf32>
    %196 = vector.broadcast %2 : vector<1x128xf32> to vector<8x128xf32>
    %197 = arith.mulf %195, %196 : vector<8x128xf32>
    %198 = vector.broadcast %3 : vector<1x128xf32> to vector<8x128xf32>
    %199 = arith.addf %197, %198 : vector<8x128xf32>
    %200 = vector.extract_strided_slice %199 {offsets = [0, 0], sizes = [8, 32], strides = [1, 1]} : vector<8x128xf32> to vector<8x32xf32>
    %201 = vector.extract_strided_slice %199 {offsets = [0, 32], sizes = [8, 32], strides = [1, 1]} : vector<8x128xf32> to vector<8x32xf32>
    %202 = vector.extract_strided_slice %199 {offsets = [0, 64], sizes = [8, 32], strides = [1, 1]} : vector<8x128xf32> to vector<8x32xf32>
    %203 = vector.extract_strided_slice %199 {offsets = [0, 96], sizes = [8, 32], strides = [1, 1]} : vector<8x128xf32> to vector<8x32xf32>
    %204 = arith.mulf %201, %147 : vector<8x32xf32>
    %205 = arith.mulf %200, %202 : vector<8x32xf32>
    %206 = arith.addf %204, %205 : vector<8x32xf32>
    %207 = math.tanh %206 : vector<8x32xf32>
    %208 = arith.mulf %203, %207 : vector<8x32xf32>
    %209 = tpu.concatenate %188, %169 in 1 : vector<8x32xf32>, vector<8x32xf32> -> vector<8x64xf32>
    %210 = arith.truncf %209 : vector<8x64xf32> to vector<8x64xbf16>
    %c48_46 = arith.constant 48 : index
    %c0_47 = arith.constant 0 : index
    %211 = vector.load %arg2[%c48_46, %c0_47] : memref<208x128xbf16, #tpu.memory_space<vmem>>, vector<64x128xbf16>
    %cst_48 = arith.constant dense<0.000000e+00> : vector<8x128xf32>
    %212 = tpu.matmul %210, %211, %cst_48 {dimension_numbers = #tpu.dot_dimension_numbers<[1], [0], [0], [1], [0, 0, 1, 1], [], []>} : vector<8x64xbf16>, vector<64x128xbf16>, vector<8x128xf32> -> vector<8x128xf32>
    %213 = vector.broadcast %0 : vector<1x128xf32> to vector<8x128xf32>
    %214 = arith.addf %212, %213 : vector<8x128xf32>
    %215 = math.tanh %214 : vector<8x128xf32>
    %216 = vector.broadcast %2 : vector<1x128xf32> to vector<8x128xf32>
    %217 = arith.mulf %215, %216 : vector<8x128xf32>
    %218 = vector.broadcast %3 : vector<1x128xf32> to vector<8x128xf32>
    %219 = arith.addf %217, %218 : vector<8x128xf32>
    %220 = vector.extract_strided_slice %219 {offsets = [0, 0], sizes = [8, 32], strides = [1, 1]} : vector<8x128xf32> to vector<8x32xf32>
    %221 = vector.extract_strided_slice %219 {offsets = [0, 32], sizes = [8, 32], strides = [1, 1]} : vector<8x128xf32> to vector<8x32xf32>
    %222 = vector.extract_strided_slice %219 {offsets = [0, 64], sizes = [8, 32], strides = [1, 1]} : vector<8x128xf32> to vector<8x32xf32>
    %223 = vector.extract_strided_slice %219 {offsets = [0, 96], sizes = [8, 32], strides = [1, 1]} : vector<8x128xf32> to vector<8x32xf32>
    %224 = arith.mulf %221, %167 : vector<8x32xf32>
    %225 = arith.mulf %220, %222 : vector<8x32xf32>
    %226 = arith.addf %224, %225 : vector<8x32xf32>
    %227 = math.tanh %226 : vector<8x32xf32>
    %228 = arith.mulf %223, %227 : vector<8x32xf32>
    %229 = arith.truncf %188 : vector<8x32xf32> to vector<8x32xbf16>
    %c16_49 = arith.constant 16 : index
    %c0_50 = arith.constant 0 : index
    %230 = vector.load %arg2[%c16_49, %c0_50] : memref<208x128xbf16, #tpu.memory_space<vmem>>, vector<32x128xbf16>
    %cst_51 = arith.constant dense<0.000000e+00> : vector<8x128xf32>
    %231 = tpu.matmul %229, %230, %cst_51 {dimension_numbers = #tpu.dot_dimension_numbers<[1], [0], [0], [1], [0, 0, 1, 1], [], []>} : vector<8x32xbf16>, vector<32x128xbf16>, vector<8x128xf32> -> vector<8x128xf32>
    %c32 = arith.constant 32 : index
    %c0_52 = arith.constant 0 : index
    %232 = vector.load %arg5[%c32, %c0_52] : memref<64x128xf32, #tpu.memory_space<vmem>>, vector<8x128xf32>
    %233 = arith.addf %231, %232 : vector<8x128xf32>
    %234 = math.tanh %233 : vector<8x128xf32>
    %235 = vector.broadcast %2 : vector<1x128xf32> to vector<8x128xf32>
    %236 = arith.mulf %234, %235 : vector<8x128xf32>
    %237 = vector.broadcast %3 : vector<1x128xf32> to vector<8x128xf32>
    %238 = arith.addf %236, %237 : vector<8x128xf32>
    %239 = vector.extract_strided_slice %238 {offsets = [0, 0], sizes = [8, 32], strides = [1, 1]} : vector<8x128xf32> to vector<8x32xf32>
    %240 = vector.extract_strided_slice %238 {offsets = [0, 32], sizes = [8, 32], strides = [1, 1]} : vector<8x128xf32> to vector<8x32xf32>
    %241 = vector.extract_strided_slice %238 {offsets = [0, 64], sizes = [8, 32], strides = [1, 1]} : vector<8x128xf32> to vector<8x32xf32>
    %242 = vector.extract_strided_slice %238 {offsets = [0, 96], sizes = [8, 32], strides = [1, 1]} : vector<8x128xf32> to vector<8x32xf32>
    %243 = arith.mulf %240, %186 : vector<8x32xf32>
    %244 = arith.mulf %239, %241 : vector<8x32xf32>
    %245 = arith.addf %243, %244 : vector<8x32xf32>
    %246 = math.tanh %245 : vector<8x32xf32>
    %247 = arith.mulf %242, %246 : vector<8x32xf32>
    %248 = tpu.concatenate %228, %208 in 1 : vector<8x32xf32>, vector<8x32xf32> -> vector<8x64xf32>
    %249 = arith.truncf %248 : vector<8x64xf32> to vector<8x64xbf16>
    %c112_53 = arith.constant 112 : index
    %c0_54 = arith.constant 0 : index
    %250 = vector.load %arg2[%c112_53, %c0_54] : memref<208x128xbf16, #tpu.memory_space<vmem>>, vector<64x128xbf16>
    %cst_55 = arith.constant dense<0.000000e+00> : vector<8x128xf32>
    %251 = tpu.matmul %249, %250, %cst_55 {dimension_numbers = #tpu.dot_dimension_numbers<[1], [0], [0], [1], [0, 0, 1, 1], [], []>} : vector<8x64xbf16>, vector<64x128xbf16>, vector<8x128xf32> -> vector<8x128xf32>
    %252 = vector.broadcast %1 : vector<1x128xf32> to vector<8x128xf32>
    %253 = arith.addf %251, %252 : vector<8x128xf32>
    %254 = math.tanh %253 : vector<8x128xf32>
    %255 = vector.broadcast %2 : vector<1x128xf32> to vector<8x128xf32>
    %256 = arith.mulf %254, %255 : vector<8x128xf32>
    %257 = vector.broadcast %3 : vector<1x128xf32> to vector<8x128xf32>
    %258 = arith.addf %256, %257 : vector<8x128xf32>
    %259 = vector.extract_strided_slice %258 {offsets = [0, 0], sizes = [8, 32], strides = [1, 1]} : vector<8x128xf32> to vector<8x32xf32>
    %260 = vector.extract_strided_slice %258 {offsets = [0, 32], sizes = [8, 32], strides = [1, 1]} : vector<8x128xf32> to vector<8x32xf32>
    %261 = vector.extract_strided_slice %258 {offsets = [0, 64], sizes = [8, 32], strides = [1, 1]} : vector<8x128xf32> to vector<8x32xf32>
    %262 = vector.extract_strided_slice %258 {offsets = [0, 96], sizes = [8, 32], strides = [1, 1]} : vector<8x128xf32> to vector<8x32xf32>
    %263 = arith.mulf %260, %206 : vector<8x32xf32>
    %264 = arith.mulf %259, %261 : vector<8x32xf32>
    %265 = arith.addf %263, %264 : vector<8x32xf32>
    %266 = math.tanh %265 : vector<8x32xf32>
    %267 = arith.mulf %262, %266 : vector<8x32xf32>
    %268 = tpu.concatenate %247, %228 in 1 : vector<8x32xf32>, vector<8x32xf32> -> vector<8x64xf32>
    %269 = arith.truncf %268 : vector<8x64xf32> to vector<8x64xbf16>
    %c48_56 = arith.constant 48 : index
    %c0_57 = arith.constant 0 : index
    %270 = vector.load %arg2[%c48_56, %c0_57] : memref<208x128xbf16, #tpu.memory_space<vmem>>, vector<64x128xbf16>
    %cst_58 = arith.constant dense<0.000000e+00> : vector<8x128xf32>
    %271 = tpu.matmul %269, %270, %cst_58 {dimension_numbers = #tpu.dot_dimension_numbers<[1], [0], [0], [1], [0, 0, 1, 1], [], []>} : vector<8x64xbf16>, vector<64x128xbf16>, vector<8x128xf32> -> vector<8x128xf32>
    %272 = vector.broadcast %0 : vector<1x128xf32> to vector<8x128xf32>
    %273 = arith.addf %271, %272 : vector<8x128xf32>
    %274 = math.tanh %273 : vector<8x128xf32>
    %275 = vector.broadcast %2 : vector<1x128xf32> to vector<8x128xf32>
    %276 = arith.mulf %274, %275 : vector<8x128xf32>
    %277 = vector.broadcast %3 : vector<1x128xf32> to vector<8x128xf32>
    %278 = arith.addf %276, %277 : vector<8x128xf32>
    %279 = vector.extract_strided_slice %278 {offsets = [0, 0], sizes = [8, 32], strides = [1, 1]} : vector<8x128xf32> to vector<8x32xf32>
    %280 = vector.extract_strided_slice %278 {offsets = [0, 32], sizes = [8, 32], strides = [1, 1]} : vector<8x128xf32> to vector<8x32xf32>
    %281 = vector.extract_strided_slice %278 {offsets = [0, 64], sizes = [8, 32], strides = [1, 1]} : vector<8x128xf32> to vector<8x32xf32>
    %282 = vector.extract_strided_slice %278 {offsets = [0, 96], sizes = [8, 32], strides = [1, 1]} : vector<8x128xf32> to vector<8x32xf32>
    %283 = arith.mulf %280, %226 : vector<8x32xf32>
    %284 = arith.mulf %279, %281 : vector<8x32xf32>
    %285 = arith.addf %283, %284 : vector<8x32xf32>
    %286 = math.tanh %285 : vector<8x32xf32>
    %287 = arith.mulf %282, %286 : vector<8x32xf32>
    %288 = arith.truncf %247 : vector<8x32xf32> to vector<8x32xbf16>
    %c16_59 = arith.constant 16 : index
    %c0_60 = arith.constant 0 : index
    %289 = vector.load %arg2[%c16_59, %c0_60] : memref<208x128xbf16, #tpu.memory_space<vmem>>, vector<32x128xbf16>
    %cst_61 = arith.constant dense<0.000000e+00> : vector<8x128xf32>
    %290 = tpu.matmul %288, %289, %cst_61 {dimension_numbers = #tpu.dot_dimension_numbers<[1], [0], [0], [1], [0, 0, 1, 1], [], []>} : vector<8x32xbf16>, vector<32x128xbf16>, vector<8x128xf32> -> vector<8x128xf32>
    %c40 = arith.constant 40 : index
    %c0_62 = arith.constant 0 : index
    %291 = vector.load %arg5[%c40, %c0_62] : memref<64x128xf32, #tpu.memory_space<vmem>>, vector<8x128xf32>
    %292 = arith.addf %290, %291 : vector<8x128xf32>
    %293 = math.tanh %292 : vector<8x128xf32>
    %294 = vector.broadcast %2 : vector<1x128xf32> to vector<8x128xf32>
    %295 = arith.mulf %293, %294 : vector<8x128xf32>
    %296 = vector.broadcast %3 : vector<1x128xf32> to vector<8x128xf32>
    %297 = arith.addf %295, %296 : vector<8x128xf32>
    %298 = vector.extract_strided_slice %297 {offsets = [0, 0], sizes = [8, 32], strides = [1, 1]} : vector<8x128xf32> to vector<8x32xf32>
    %299 = vector.extract_strided_slice %297 {offsets = [0, 32], sizes = [8, 32], strides = [1, 1]} : vector<8x128xf32> to vector<8x32xf32>
    %300 = vector.extract_strided_slice %297 {offsets = [0, 64], sizes = [8, 32], strides = [1, 1]} : vector<8x128xf32> to vector<8x32xf32>
    %301 = vector.extract_strided_slice %297 {offsets = [0, 96], sizes = [8, 32], strides = [1, 1]} : vector<8x128xf32> to vector<8x32xf32>
    %302 = arith.mulf %299, %245 : vector<8x32xf32>
    %303 = arith.mulf %298, %300 : vector<8x32xf32>
    %304 = arith.addf %302, %303 : vector<8x32xf32>
    %305 = math.tanh %304 : vector<8x32xf32>
    %306 = arith.mulf %301, %305 : vector<8x32xf32>
    %307 = tpu.concatenate %287, %267 in 1 : vector<8x32xf32>, vector<8x32xf32> -> vector<8x64xf32>
    %308 = arith.truncf %307 : vector<8x64xf32> to vector<8x64xbf16>
    %c112_63 = arith.constant 112 : index
    %c0_64 = arith.constant 0 : index
    %309 = vector.load %arg2[%c112_63, %c0_64] : memref<208x128xbf16, #tpu.memory_space<vmem>>, vector<64x128xbf16>
    %cst_65 = arith.constant dense<0.000000e+00> : vector<8x128xf32>
    %310 = tpu.matmul %308, %309, %cst_65 {dimension_numbers = #tpu.dot_dimension_numbers<[1], [0], [0], [1], [0, 0, 1, 1], [], []>} : vector<8x64xbf16>, vector<64x128xbf16>, vector<8x128xf32> -> vector<8x128xf32>
    %311 = vector.broadcast %1 : vector<1x128xf32> to vector<8x128xf32>
    %312 = arith.addf %310, %311 : vector<8x128xf32>
    %313 = math.tanh %312 : vector<8x128xf32>
    %314 = vector.broadcast %2 : vector<1x128xf32> to vector<8x128xf32>
    %315 = arith.mulf %313, %314 : vector<8x128xf32>
    %316 = vector.broadcast %3 : vector<1x128xf32> to vector<8x128xf32>
    %317 = arith.addf %315, %316 : vector<8x128xf32>
    %318 = vector.extract_strided_slice %317 {offsets = [0, 0], sizes = [8, 32], strides = [1, 1]} : vector<8x128xf32> to vector<8x32xf32>
    %319 = vector.extract_strided_slice %317 {offsets = [0, 32], sizes = [8, 32], strides = [1, 1]} : vector<8x128xf32> to vector<8x32xf32>
    %320 = vector.extract_strided_slice %317 {offsets = [0, 64], sizes = [8, 32], strides = [1, 1]} : vector<8x128xf32> to vector<8x32xf32>
    %321 = vector.extract_strided_slice %317 {offsets = [0, 96], sizes = [8, 32], strides = [1, 1]} : vector<8x128xf32> to vector<8x32xf32>
    %322 = arith.mulf %319, %265 : vector<8x32xf32>
    %323 = arith.mulf %318, %320 : vector<8x32xf32>
    %324 = arith.addf %322, %323 : vector<8x32xf32>
    %325 = math.tanh %324 : vector<8x32xf32>
    %326 = arith.mulf %321, %325 : vector<8x32xf32>
    %327 = tpu.concatenate %306, %287 in 1 : vector<8x32xf32>, vector<8x32xf32> -> vector<8x64xf32>
    %328 = arith.truncf %327 : vector<8x64xf32> to vector<8x64xbf16>
    %c48_66 = arith.constant 48 : index
    %c0_67 = arith.constant 0 : index
    %329 = vector.load %arg2[%c48_66, %c0_67] : memref<208x128xbf16, #tpu.memory_space<vmem>>, vector<64x128xbf16>
    %cst_68 = arith.constant dense<0.000000e+00> : vector<8x128xf32>
    %330 = tpu.matmul %328, %329, %cst_68 {dimension_numbers = #tpu.dot_dimension_numbers<[1], [0], [0], [1], [0, 0, 1, 1], [], []>} : vector<8x64xbf16>, vector<64x128xbf16>, vector<8x128xf32> -> vector<8x128xf32>
    %331 = vector.broadcast %0 : vector<1x128xf32> to vector<8x128xf32>
    %332 = arith.addf %330, %331 : vector<8x128xf32>
    %333 = math.tanh %332 : vector<8x128xf32>
    %334 = vector.broadcast %2 : vector<1x128xf32> to vector<8x128xf32>
    %335 = arith.mulf %333, %334 : vector<8x128xf32>
    %336 = vector.broadcast %3 : vector<1x128xf32> to vector<8x128xf32>
    %337 = arith.addf %335, %336 : vector<8x128xf32>
    %338 = vector.extract_strided_slice %337 {offsets = [0, 0], sizes = [8, 32], strides = [1, 1]} : vector<8x128xf32> to vector<8x32xf32>
    %339 = vector.extract_strided_slice %337 {offsets = [0, 32], sizes = [8, 32], strides = [1, 1]} : vector<8x128xf32> to vector<8x32xf32>
    %340 = vector.extract_strided_slice %337 {offsets = [0, 64], sizes = [8, 32], strides = [1, 1]} : vector<8x128xf32> to vector<8x32xf32>
    %341 = vector.extract_strided_slice %337 {offsets = [0, 96], sizes = [8, 32], strides = [1, 1]} : vector<8x128xf32> to vector<8x32xf32>
    %342 = arith.mulf %339, %285 : vector<8x32xf32>
    %343 = arith.mulf %338, %340 : vector<8x32xf32>
    %344 = arith.addf %342, %343 : vector<8x32xf32>
    %345 = math.tanh %344 : vector<8x32xf32>
    %346 = arith.mulf %341, %345 : vector<8x32xf32>
    %347 = arith.truncf %306 : vector<8x32xf32> to vector<8x32xbf16>
    %c16_69 = arith.constant 16 : index
    %c0_70 = arith.constant 0 : index
    %348 = vector.load %arg2[%c16_69, %c0_70] : memref<208x128xbf16, #tpu.memory_space<vmem>>, vector<32x128xbf16>
    %cst_71 = arith.constant dense<0.000000e+00> : vector<8x128xf32>
    %349 = tpu.matmul %347, %348, %cst_71 {dimension_numbers = #tpu.dot_dimension_numbers<[1], [0], [0], [1], [0, 0, 1, 1], [], []>} : vector<8x32xbf16>, vector<32x128xbf16>, vector<8x128xf32> -> vector<8x128xf32>
    %c48_72 = arith.constant 48 : index
    %c0_73 = arith.constant 0 : index
    %350 = vector.load %arg5[%c48_72, %c0_73] : memref<64x128xf32, #tpu.memory_space<vmem>>, vector<8x128xf32>
    %351 = arith.addf %349, %350 : vector<8x128xf32>
    %352 = math.tanh %351 : vector<8x128xf32>
    %353 = vector.broadcast %2 : vector<1x128xf32> to vector<8x128xf32>
    %354 = arith.mulf %352, %353 : vector<8x128xf32>
    %355 = vector.broadcast %3 : vector<1x128xf32> to vector<8x128xf32>
    %356 = arith.addf %354, %355 : vector<8x128xf32>
    %357 = vector.extract_strided_slice %356 {offsets = [0, 0], sizes = [8, 32], strides = [1, 1]} : vector<8x128xf32> to vector<8x32xf32>
    %358 = vector.extract_strided_slice %356 {offsets = [0, 32], sizes = [8, 32], strides = [1, 1]} : vector<8x128xf32> to vector<8x32xf32>
    %359 = vector.extract_strided_slice %356 {offsets = [0, 64], sizes = [8, 32], strides = [1, 1]} : vector<8x128xf32> to vector<8x32xf32>
    %360 = vector.extract_strided_slice %356 {offsets = [0, 96], sizes = [8, 32], strides = [1, 1]} : vector<8x128xf32> to vector<8x32xf32>
    %361 = arith.mulf %358, %304 : vector<8x32xf32>
    %362 = arith.mulf %357, %359 : vector<8x32xf32>
    %363 = arith.addf %361, %362 : vector<8x32xf32>
    %364 = math.tanh %363 : vector<8x32xf32>
    %365 = arith.mulf %360, %364 : vector<8x32xf32>
    %366 = tpu.concatenate %346, %326 in 1 : vector<8x32xf32>, vector<8x32xf32> -> vector<8x64xf32>
    %367 = arith.truncf %366 : vector<8x64xf32> to vector<8x64xbf16>
    %c112_74 = arith.constant 112 : index
    %c0_75 = arith.constant 0 : index
    %368 = vector.load %arg2[%c112_74, %c0_75] : memref<208x128xbf16, #tpu.memory_space<vmem>>, vector<64x128xbf16>
    %cst_76 = arith.constant dense<0.000000e+00> : vector<8x128xf32>
    %369 = tpu.matmul %367, %368, %cst_76 {dimension_numbers = #tpu.dot_dimension_numbers<[1], [0], [0], [1], [0, 0, 1, 1], [], []>} : vector<8x64xbf16>, vector<64x128xbf16>, vector<8x128xf32> -> vector<8x128xf32>
    %370 = vector.broadcast %1 : vector<1x128xf32> to vector<8x128xf32>
    %371 = arith.addf %369, %370 : vector<8x128xf32>
    %372 = math.tanh %371 : vector<8x128xf32>
    %373 = vector.broadcast %2 : vector<1x128xf32> to vector<8x128xf32>
    %374 = arith.mulf %372, %373 : vector<8x128xf32>
    %375 = vector.broadcast %3 : vector<1x128xf32> to vector<8x128xf32>
    %376 = arith.addf %374, %375 : vector<8x128xf32>
    %377 = vector.extract_strided_slice %376 {offsets = [0, 0], sizes = [8, 32], strides = [1, 1]} : vector<8x128xf32> to vector<8x32xf32>
    %378 = vector.extract_strided_slice %376 {offsets = [0, 32], sizes = [8, 32], strides = [1, 1]} : vector<8x128xf32> to vector<8x32xf32>
    %379 = vector.extract_strided_slice %376 {offsets = [0, 64], sizes = [8, 32], strides = [1, 1]} : vector<8x128xf32> to vector<8x32xf32>
    %380 = vector.extract_strided_slice %376 {offsets = [0, 96], sizes = [8, 32], strides = [1, 1]} : vector<8x128xf32> to vector<8x32xf32>
    %381 = arith.mulf %378, %324 : vector<8x32xf32>
    %382 = arith.mulf %377, %379 : vector<8x32xf32>
    %383 = arith.addf %381, %382 : vector<8x32xf32>
    %384 = math.tanh %383 : vector<8x32xf32>
    %385 = arith.mulf %380, %384 : vector<8x32xf32>
    %386 = tpu.concatenate %365, %346 in 1 : vector<8x32xf32>, vector<8x32xf32> -> vector<8x64xf32>
    %387 = arith.truncf %386 : vector<8x64xf32> to vector<8x64xbf16>
    %c48_77 = arith.constant 48 : index
    %c0_78 = arith.constant 0 : index
    %388 = vector.load %arg2[%c48_77, %c0_78] : memref<208x128xbf16, #tpu.memory_space<vmem>>, vector<64x128xbf16>
    %cst_79 = arith.constant dense<0.000000e+00> : vector<8x128xf32>
    %389 = tpu.matmul %387, %388, %cst_79 {dimension_numbers = #tpu.dot_dimension_numbers<[1], [0], [0], [1], [0, 0, 1, 1], [], []>} : vector<8x64xbf16>, vector<64x128xbf16>, vector<8x128xf32> -> vector<8x128xf32>
    %390 = vector.broadcast %0 : vector<1x128xf32> to vector<8x128xf32>
    %391 = arith.addf %389, %390 : vector<8x128xf32>
    %392 = math.tanh %391 : vector<8x128xf32>
    %393 = vector.broadcast %2 : vector<1x128xf32> to vector<8x128xf32>
    %394 = arith.mulf %392, %393 : vector<8x128xf32>
    %395 = vector.broadcast %3 : vector<1x128xf32> to vector<8x128xf32>
    %396 = arith.addf %394, %395 : vector<8x128xf32>
    %397 = vector.extract_strided_slice %396 {offsets = [0, 0], sizes = [8, 32], strides = [1, 1]} : vector<8x128xf32> to vector<8x32xf32>
    %398 = vector.extract_strided_slice %396 {offsets = [0, 32], sizes = [8, 32], strides = [1, 1]} : vector<8x128xf32> to vector<8x32xf32>
    %399 = vector.extract_strided_slice %396 {offsets = [0, 64], sizes = [8, 32], strides = [1, 1]} : vector<8x128xf32> to vector<8x32xf32>
    %400 = vector.extract_strided_slice %396 {offsets = [0, 96], sizes = [8, 32], strides = [1, 1]} : vector<8x128xf32> to vector<8x32xf32>
    %401 = arith.mulf %398, %344 : vector<8x32xf32>
    %402 = arith.mulf %397, %399 : vector<8x32xf32>
    %403 = arith.addf %401, %402 : vector<8x32xf32>
    %404 = math.tanh %403 : vector<8x32xf32>
    %405 = arith.mulf %400, %404 : vector<8x32xf32>
    %406 = arith.truncf %365 : vector<8x32xf32> to vector<8x32xbf16>
    %c16_80 = arith.constant 16 : index
    %c0_81 = arith.constant 0 : index
    %407 = vector.load %arg2[%c16_80, %c0_81] : memref<208x128xbf16, #tpu.memory_space<vmem>>, vector<32x128xbf16>
    %cst_82 = arith.constant dense<0.000000e+00> : vector<8x128xf32>
    %408 = tpu.matmul %406, %407, %cst_82 {dimension_numbers = #tpu.dot_dimension_numbers<[1], [0], [0], [1], [0, 0, 1, 1], [], []>} : vector<8x32xbf16>, vector<32x128xbf16>, vector<8x128xf32> -> vector<8x128xf32>
    %c56 = arith.constant 56 : index
    %c0_83 = arith.constant 0 : index
    %409 = vector.load %arg5[%c56, %c0_83] : memref<64x128xf32, #tpu.memory_space<vmem>>, vector<8x128xf32>
    %410 = arith.addf %408, %409 : vector<8x128xf32>
    %411 = math.tanh %410 : vector<8x128xf32>
    %412 = vector.broadcast %2 : vector<1x128xf32> to vector<8x128xf32>
    %413 = arith.mulf %411, %412 : vector<8x128xf32>
    %414 = vector.broadcast %3 : vector<1x128xf32> to vector<8x128xf32>
    %415 = arith.addf %413, %414 : vector<8x128xf32>
    %416 = vector.extract_strided_slice %415 {offsets = [0, 0], sizes = [8, 32], strides = [1, 1]} : vector<8x128xf32> to vector<8x32xf32>
    %417 = vector.extract_strided_slice %415 {offsets = [0, 32], sizes = [8, 32], strides = [1, 1]} : vector<8x128xf32> to vector<8x32xf32>
    %418 = vector.extract_strided_slice %415 {offsets = [0, 64], sizes = [8, 32], strides = [1, 1]} : vector<8x128xf32> to vector<8x32xf32>
    %419 = vector.extract_strided_slice %415 {offsets = [0, 96], sizes = [8, 32], strides = [1, 1]} : vector<8x128xf32> to vector<8x32xf32>
    %420 = arith.mulf %417, %363 : vector<8x32xf32>
    %421 = arith.mulf %416, %418 : vector<8x32xf32>
    %422 = arith.addf %420, %421 : vector<8x32xf32>
    %423 = math.tanh %422 : vector<8x32xf32>
    %424 = arith.mulf %419, %423 : vector<8x32xf32>
    %425 = tpu.concatenate %405, %385 in 1 : vector<8x32xf32>, vector<8x32xf32> -> vector<8x64xf32>
    %426 = arith.truncf %425 : vector<8x64xf32> to vector<8x64xbf16>
    %c112_84 = arith.constant 112 : index
    %c0_85 = arith.constant 0 : index
    %427 = vector.load %arg2[%c112_84, %c0_85] : memref<208x128xbf16, #tpu.memory_space<vmem>>, vector<64x128xbf16>
    %cst_86 = arith.constant dense<0.000000e+00> : vector<8x128xf32>
    %428 = tpu.matmul %426, %427, %cst_86 {dimension_numbers = #tpu.dot_dimension_numbers<[1], [0], [0], [1], [0, 0, 1, 1], [], []>} : vector<8x64xbf16>, vector<64x128xbf16>, vector<8x128xf32> -> vector<8x128xf32>
    %429 = vector.broadcast %1 : vector<1x128xf32> to vector<8x128xf32>
    %430 = arith.addf %428, %429 : vector<8x128xf32>
    %431 = math.tanh %430 : vector<8x128xf32>
    %432 = vector.broadcast %2 : vector<1x128xf32> to vector<8x128xf32>
    %433 = arith.mulf %431, %432 : vector<8x128xf32>
    %434 = vector.broadcast %3 : vector<1x128xf32> to vector<8x128xf32>
    %435 = arith.addf %433, %434 : vector<8x128xf32>
    %436 = vector.extract_strided_slice %435 {offsets = [0, 0], sizes = [8, 32], strides = [1, 1]} : vector<8x128xf32> to vector<8x32xf32>
    %437 = vector.extract_strided_slice %435 {offsets = [0, 32], sizes = [8, 32], strides = [1, 1]} : vector<8x128xf32> to vector<8x32xf32>
    %438 = vector.extract_strided_slice %435 {offsets = [0, 64], sizes = [8, 32], strides = [1, 1]} : vector<8x128xf32> to vector<8x32xf32>
    %439 = vector.extract_strided_slice %435 {offsets = [0, 96], sizes = [8, 32], strides = [1, 1]} : vector<8x128xf32> to vector<8x32xf32>
    %440 = arith.mulf %437, %383 : vector<8x32xf32>
    %441 = arith.mulf %436, %438 : vector<8x32xf32>
    %442 = arith.addf %440, %441 : vector<8x32xf32>
    %443 = math.tanh %442 : vector<8x32xf32>
    %444 = arith.mulf %439, %443 : vector<8x32xf32>
    %445 = tpu.concatenate %424, %405 in 1 : vector<8x32xf32>, vector<8x32xf32> -> vector<8x64xf32>
    %446 = arith.truncf %445 : vector<8x64xf32> to vector<8x64xbf16>
    %c48_87 = arith.constant 48 : index
    %c0_88 = arith.constant 0 : index
    %447 = vector.load %arg2[%c48_87, %c0_88] : memref<208x128xbf16, #tpu.memory_space<vmem>>, vector<64x128xbf16>
    %cst_89 = arith.constant dense<0.000000e+00> : vector<8x128xf32>
    %448 = tpu.matmul %446, %447, %cst_89 {dimension_numbers = #tpu.dot_dimension_numbers<[1], [0], [0], [1], [0, 0, 1, 1], [], []>} : vector<8x64xbf16>, vector<64x128xbf16>, vector<8x128xf32> -> vector<8x128xf32>
    %449 = vector.broadcast %0 : vector<1x128xf32> to vector<8x128xf32>
    %450 = arith.addf %448, %449 : vector<8x128xf32>
    %451 = math.tanh %450 : vector<8x128xf32>
    %452 = vector.broadcast %2 : vector<1x128xf32> to vector<8x128xf32>
    %453 = arith.mulf %451, %452 : vector<8x128xf32>
    %454 = vector.broadcast %3 : vector<1x128xf32> to vector<8x128xf32>
    %455 = arith.addf %453, %454 : vector<8x128xf32>
    %456 = vector.extract_strided_slice %455 {offsets = [0, 0], sizes = [8, 32], strides = [1, 1]} : vector<8x128xf32> to vector<8x32xf32>
    %457 = vector.extract_strided_slice %455 {offsets = [0, 32], sizes = [8, 32], strides = [1, 1]} : vector<8x128xf32> to vector<8x32xf32>
    %458 = vector.extract_strided_slice %455 {offsets = [0, 64], sizes = [8, 32], strides = [1, 1]} : vector<8x128xf32> to vector<8x32xf32>
    %459 = vector.extract_strided_slice %455 {offsets = [0, 96], sizes = [8, 32], strides = [1, 1]} : vector<8x128xf32> to vector<8x32xf32>
    %460 = arith.mulf %457, %403 : vector<8x32xf32>
    %461 = arith.mulf %456, %458 : vector<8x32xf32>
    %462 = arith.addf %460, %461 : vector<8x32xf32>
    %463 = math.tanh %462 : vector<8x32xf32>
    %464 = arith.mulf %459, %463 : vector<8x32xf32>
    %465 = tpu.concatenate %464, %444 in 1 : vector<8x32xf32>, vector<8x32xf32> -> vector<8x64xf32>
    %466 = arith.truncf %465 : vector<8x64xf32> to vector<8x64xbf16>
    %c112_90 = arith.constant 112 : index
    %c0_91 = arith.constant 0 : index
    %467 = vector.load %arg2[%c112_90, %c0_91] : memref<208x128xbf16, #tpu.memory_space<vmem>>, vector<64x128xbf16>
    %cst_92 = arith.constant dense<0.000000e+00> : vector<8x128xf32>
    %468 = tpu.matmul %466, %467, %cst_92 {dimension_numbers = #tpu.dot_dimension_numbers<[1], [0], [0], [1], [0, 0, 1, 1], [], []>} : vector<8x64xbf16>, vector<64x128xbf16>, vector<8x128xf32> -> vector<8x128xf32>
    %469 = vector.broadcast %1 : vector<1x128xf32> to vector<8x128xf32>
    %470 = arith.addf %468, %469 : vector<8x128xf32>
    %471 = math.tanh %470 : vector<8x128xf32>
    %472 = vector.broadcast %2 : vector<1x128xf32> to vector<8x128xf32>
    %473 = arith.mulf %471, %472 : vector<8x128xf32>
    %474 = vector.broadcast %3 : vector<1x128xf32> to vector<8x128xf32>
    %475 = arith.addf %473, %474 : vector<8x128xf32>
    %476 = vector.extract_strided_slice %475 {offsets = [0, 0], sizes = [8, 32], strides = [1, 1]} : vector<8x128xf32> to vector<8x32xf32>
    %477 = vector.extract_strided_slice %475 {offsets = [0, 32], sizes = [8, 32], strides = [1, 1]} : vector<8x128xf32> to vector<8x32xf32>
    %478 = vector.extract_strided_slice %475 {offsets = [0, 64], sizes = [8, 32], strides = [1, 1]} : vector<8x128xf32> to vector<8x32xf32>
    %479 = vector.extract_strided_slice %475 {offsets = [0, 96], sizes = [8, 32], strides = [1, 1]} : vector<8x128xf32> to vector<8x32xf32>
    %480 = arith.mulf %477, %442 : vector<8x32xf32>
    %481 = arith.mulf %476, %478 : vector<8x32xf32>
    %482 = arith.addf %480, %481 : vector<8x32xf32>
    %483 = math.tanh %482 : vector<8x32xf32>
    %484 = arith.mulf %479, %483 : vector<8x32xf32>
    %485 = arith.truncf %484 : vector<8x32xf32> to vector<8x32xbf16>
    %c176 = arith.constant 176 : index
    %c0_93 = arith.constant 0 : index
    %486 = vector.load %arg2[%c176, %c0_93] : memref<208x128xbf16, #tpu.memory_space<vmem>>, vector<32x128xbf16>
    %cst_94 = arith.constant dense<0.000000e+00> : vector<8x128xf32>
    %487 = tpu.matmul %485, %486, %cst_94 {dimension_numbers = #tpu.dot_dimension_numbers<[1], [0], [0], [1], [0, 0, 1, 1], [], []>} : vector<8x32xbf16>, vector<32x128xbf16>, vector<8x128xf32> -> vector<8x128xf32>
    %c3 = arith.constant 3 : index
    %c0_95 = arith.constant 0 : index
    %488 = vector.load %arg3[%c3, %c0_95] : memref<8x128xf32, #tpu.memory_space<vmem>>, vector<1x128xf32>
    %489 = vector.broadcast %488 : vector<1x128xf32> to vector<8x128xf32>
    %490 = arith.addf %487, %489 : vector<8x128xf32>
    %491 = math.tanh %490 : vector<8x128xf32>
    %c5 = arith.constant 5 : index
    %c0_96 = arith.constant 0 : index
    %492 = vector.load %arg3[%c5, %c0_96] : memref<8x128xf32, #tpu.memory_space<vmem>>, vector<1x128xf32>
    %493 = vector.extract_strided_slice %492 {offsets = [0, 0], sizes = [1, 1], strides = [1, 1]} : vector<1x128xf32> to vector<1x1xf32>
    %c4 = arith.constant 4 : index
    %c0_97 = arith.constant 0 : index
    %494 = vector.load %arg3[%c4, %c0_97] : memref<8x128xf32, #tpu.memory_space<vmem>>, vector<1x128xf32>
    %495 = vector.broadcast %494 : vector<1x128xf32> to vector<8x128xf32>
    %496 = arith.mulf %491, %495 : vector<8x128xf32>
    %cst_98 = arith.constant dense<0.000000e+00> : vector<8xf32>
    %497 = vector.multi_reduction <add>, %496, %cst_98 [1] : vector<8x128xf32> to vector<8xf32>
    %498 = vector.shape_cast %497 : vector<8xf32> to vector<8x1xf32>
    %499 = vector.broadcast %493 : vector<1x1xf32> to vector<8x1xf32>
    %500 = arith.addf %498, %499 : vector<8x1xf32>
    %c0_99 = arith.constant 0 : index
    %c0_100 = arith.constant 0 : index
    %501 = vector.load %arg4[%c0_99, %c0_100] : memref<8x1xf32, #tpu.memory_space<vmem>>, vector<8x1xf32>
    tpu.vector_store %arg4[%c0_99, %c0_100], %500 {strides = array<i32>} : memref<8x1xf32, #tpu.memory_space<vmem>>, vector<8x1xf32>,
    return
  }
  func.func @transform_0(%arg0: i32) -> (i32, i32, i32) {
    %c0_i32 = arith.constant 0 : i32
    %c0_i32_0 = arith.constant 0 : i32
    %c0_i32_1 = arith.constant 0 : i32
    return %arg0, %c0_i32, %c0_i32_0 : i32, i32, i32
  }
  func.func @transform_1(%arg0: i32) -> (i32, i32) {
    %c0_i32 = arith.constant 0 : i32
    %c0_i32_0 = arith.constant 0 : i32
    %c0_i32_1 = arith.constant 0 : i32
    return %c0_i32, %c0_i32_0 : i32, i32
  }
  func.func @transform_2(%arg0: i32) -> (i32, i32) {
    %c0_i32 = arith.constant 0 : i32
    %c0_i32_0 = arith.constant 0 : i32
    %c0_i32_1 = arith.constant 0 : i32
    return %c0_i32, %c0_i32_0 : i32, i32
  }
  func.func @transform_3(%arg0: i32) -> (i32, i32) {
    %c0_i32 = arith.constant 0 : i32
    %c0_i32_0 = arith.constant 0 : i32
    return %arg0, %c0_i32 : i32, i32
  }
}

</mosaic_0001>

<bundles_post_ra>
// kernel: lstm_arbitrage_forward.1
= control target key start
LH: loop header
LB: loop body
LE: loop exit
PB: predicated region body
PF: predicated region fallthrough
CT: control target
= control target key end

     0   :  { %s2891_s12 = smov 0   ;;  %s3618_s0 = inlined_call_operand.vmem [shape: bf16[2,64,16], index: 0, kind: input, shape index: {}]   ;;  %s3619_s1 = inlined_call_operand.vmem [shape: bf16[208,128], index: 1, kind: input, shape index: {}]   ;;  %s3620_s2 = inlined_call_operand.vmem [shape: f32[8,128], index: 2, kind: input, shape index: {}]   ;;  %s3621_s3 = inlined_call_operand.vmem [shape: f32[16,1], index: 3, kind: output, shape index: {}]  }
   0x1 LB: > { %s2230_s13 = sadd.s32 4294967295, %s2864_s12   ;;  %p2234_p0 = scmp.ge.s32.totalorder %s2864_s12, 1  ;;  %s2864_s12 = sphi %s2891_s12, %s13_s12  }
   0x2   : > { %p137_p1 = scmp.lt.s32.totalorder %s2864_s12, 3 }
   0x4   : > { %p138_p2 = pnand %p2234_p0, %p137_p1 }
   0x5   : > { %v2902_v0 = vld [vmem:[%s3619_s1 + $0x8] sm:$0xff] (!%p138_p2)   ;;  %v2866_v1 = vmov (!%p138_p2), 0.0   ;;  %v2729_v2 = vld [vmem:[%s3619_s1] sm:$0xff] (!%p138_p2)   ;;  %p160_p3 = scmp.lt.s32.totalorder (!%p138_p2), %s2230_s13, 1  ;;  %v2912_v3 = vld [vmem:[%s3619_s1 + $0x10] sm:$0xff] (!%p138_p2)   ;;  %vm215_vm0 = vcmask (!%p138_p2), 130048  }
   0x6   : > { %141 = sbr.rel (%p138_p2) target bundleno = 7526 (0x1d66), region = 32  ;;  %2416 = vmatprep.subr.bf16.mxu1 (!%p138_p2), %v2866_v1  ;;  %2406 = vmatprep.subr.bf16.mxu0 (!%p138_p2), %v2729_v2  ;;  %vm2867_vm1 = vmmov (!%p138_p2), 0   ;;  %v2868_v6 = vmov (!%p138_p2), 0   ;;  %v2941_v7 = vld [vmem:[%s3620_s2] ss:$0 sm:$0xff] (!%p138_p2)  ;;  %s2869_s30 = smov (!%p138_p2), 64  }
   0x7   : > { %2417 = vmatpush3.bf16.msra.mxu1 (!%p138_p2), %v2902_v0  ;;  %2407 = vmatpush3.bf16.msra.mxu0 (!%p138_p2), %v2729_v2  ;;  %v2953_v18 = vld [vmem:[%s3620_s2 + $0x6] ss:$0 sm:$0xff] (!%p138_p2)  ;;  %v2958_v20 = vld [vmem:[%s3620_s2 + $0x7] ss:$0 sm:$0xff] (!%p138_p2)  ;;  %s2870_s4 = smov (!%p138_p2), 32   ;;  %v2970_v28 = vld [vmem:[%s3619_s1 + $0x18] sm:$0xff] (!%p138_p2)  }
   0x8   : > { %2418 = vmatprep.subr.bf16.mxu1 (!%p138_p2), %v2866_v1  ;;  %2420 = vmatprep.mubr.msk.bf16.mxu1 (!%p138_p2), %vm2867_vm1, %v2866_v1  ;;  %v2979_v31 = vld [vmem:[%s3619_s1 + $0x20] sm:$0xff] (!%p138_p2)   ;;  %v2989_v32 = vld [vmem:[%s3619_s1 + $0x28] sm:$0xff] (!%p138_p2)   ;;  %v2997_v34 = vld [vmem:[%s3619_s1 + $0x30] sm:$0xff] (!%p138_p2)   ;;  %vm318_vm2 = vcmask (!%p138_p2), 261120   ;;  %vm432_vm3 = vcmask (!%p138_p2), 523264   ;;  %vm2175_vm4 = vcmask (!%p138_p2), 7168  }
   0x9   : > { %2424 = vmatprep.subr.bf16.mxu0 (!%p138_p2), %v2866_v1  ;;  %v3032_v47 = vld [vmem:[%s3620_s2 + $0x1] ss:$0 sm:$0xff] (!%p138_p2) }
   0xb   : > { %2419 = vmatpush3.bf16.msra.mxu1 (!%p138_p2), %v2912_v3 }
   0xc   : > { %2436 = vmatprep.subr.bf16.mxu1 (!%p138_p2), %v2866_v1 }
   0xd   : > { %s3623_s13 = smov (!%p160_p3, %s2230_s13), 1 }
   0xe   : > { %s2293_s20 = sshll.u32 %s3623_s13, 5  ;;  %2421 = vmatmul.mubr.bf16.vlgmr.msra.gmra.mrb[0].mxu1 %v2868_v6 }
   0xf   : > { %s2925_s23 = scalar_lea.vmem %s3618_s0, %s2293_s20  ;;  %2437 = vmatpush3.bf16.msra.mxu1 %v2902_v0  ;;  %2440 = vmatprep.mubr.msk.bf16.mxu1 %vm2867_vm1, %v2866_v1 }
  0x10   : > { %v2731_v4 = vld [vmem:[%s2925_s23] sm:$0xff]   ;;  %v2732_v5 = vld [vmem:[%s2925_s23 + $0x8] sm:$0xff]   ;;  %2438 = vmatprep.subr.bf16.mxu1 %v2866_v1  ;;  %v2734_v29 = vld [vmem:[%s2925_s23 + $0x10] sm:$0xff]  }
  0x11   : > { %2408 = vmatprep.mubr.msk.bf16.mxu0 %vm215_vm0, %v2731_v4  ;;  %v2736_v30 = vld [vmem:[%s2925_s23 + $0x18] sm:$0xff]  }
  0x12   : > { %2409 = vmatmul.mubr.msk.bf16.vlgmr.msra.gmra.mrb[0].mxu0 %vm215_vm0, %v2732_v5 }
  0x13   : > { %2439 = vmatpush3.bf16.msra.mxu1 %v2912_v3  ;;  %2425 = vmatpush3.bf16.msra.mxu0 %v2970_v28 }
  0x14   : > { %2444 = vmatprep.subr.bf16.mxu1 %v2866_v1  ;;  %2412 = vmatprep.mubr.msk.bf16.mxu0 %vm215_vm0, %v2734_v29 }
  0x15   : > { %2426 = vmatprep.subr.bf16.mxu0 %v2866_v1 }
  0x17   : > { %2427 = vmatpush3.bf16.msra.mxu0 %v2979_v31 }
  0x18   : > { %2428 = vmatprep.subr.bf16.mxu0 %v2866_v1 }
  0x1a   : > { %2413 = vmatmul.mubr.msk.bf16.gmra.mrb[4].mxu0 %vm215_vm0, %v2736_v30 }
  0x1b   : > { %2432 = vmatprep.mubr.msk.bf16.mxu0 %vm2867_vm1, %v2866_v1  ;;  %2429 = vmatpush3.bf16.msra.mxu0 %v2989_v32 }
  0x1c   : > { %2430 = vmatprep.subr.bf16.mxu0 %v2866_v1 }
  0x1f   : > { %2431 = vmatpush3.bf16.msra.mxu0 %v2997_v34 }
  0x20   : > { %2456 = vmatprep.subr.bf16.mxu0 %v2866_v1 }
  0xe1   : > { %v356_v8 = vpop.f32.mrb[0].mxu1 }
  0xe2   : > { %v2422_v10 = vpop.f32.mrb[1].mxu1 }
  0xe3   : > { %v359_v12 = vpop.f32.mrb[2].mxu1 }
  0xe4   : > { %v2423_v15 = vpop.f32.mrb[3].mxu1 }
  0xe5   : > { %v2943_v9 = vpop.f32.mrb[0].mxu0 }
  0xe6   : > { %v262_v11 = vpop.f32.mrb[1].mxu0 }
  0xe7   : > { %v263_v13 = vadd.f32 %v2941_v7, %v262_v11  ;;  %v2946_v14 = vpop.f32.mrb[2].mxu0 }
  0xe8   : > { %v2948_v16 = vpop.f32.mrb[3].mxu0 }
  0xe9   : > { %v357_v17 = vadd.f32 %v356_v8, %v263_v13  ;;  %v266_v46 = vadd.f32 %v2941_v7, %v2948_v16  ;;  %v3053_v16 = vld [vmem:[%s3619_s1 + $0x38] sm:$0xff]  }
  0xeb   : > { %2745 = vtanh.f32 %v357_v17  ;;  %v3059_v17 = vld [vmem:[%s3619_s1 + $0x40] sm:$0xff]  }
  0xed   : > { %v3004_v38 = vpop.f32.mrb[4].mxu0 }
  0xee   : > { %v3006_v39 = vpop.f32.mrb[5].mxu0 }
  0xef   : > { %v3008_v40 = vpop.f32.mrb[6].mxu0 }
  0xf0   : > { %v3010_v41 = vpop.f32.mrb[7].mxu0 }
  0xf5   : > { %v2746_v19 = vpop.eup %2745 }
  0xf6   : > { %v367_v21 = vmul.f32 %v2746_v19, %v2953_v18 }
  0xf8   : > { %v372_v22 = vadd.f32 %v2958_v20, %v367_v21 }
  0xfa   : > { %375 = vrot.lane.b32.xlu0 %v372_v22, %s2869_s30  ;;  %v373_v25 = vmul.f32 0.0, %v372_v22 }
 0x16c   : > { %v376_v23 = vpop.permute.xlu0 %375 }
 0x16d   : > { %v378_v24 = vmul.f32 %v376_v23, %v372_v22  ;;  %v3076_v23 = vld [vmem:[%s3619_s1 + $0x50] sm:$0xff]  }
 0x16f   : > { %380 = vrot.lane.b32.xlu0 %v378_v24, %s2870_s4 }
 0x1e1   : > { %v381_v26 = vpop.permute.xlu0 %380 }
 0x1e2   : > { %v2964_v27 = vadd.f32 %v381_v26, %v373_v25 }
 0x1e4   : > { %2747 = vtanh.f32 %v2964_v27 }
 0x1ee   : > { %v2748_v33 = vpop.eup %2747 }
 0x1ef   : > { %386 = vrot.lane.b32.xlu1 %v2748_v33, %s2869_s30 }
 0x261   : > { %v387_v35 = vpop.permute.xlu1 %386 }
 0x262   : > { %v389_v36 = vmul.f32 %v387_v35, %v372_v22  ;;  %v3068_v22 = vld [vmem:[%s3619_s1 + $0x48] sm:$0xff]  }
 0x264   : > { %v496_v37 = vpack.c.bf16 %v389_v36, %v389_v36  ;;  %391 = vrot.lane.b32.xlu1 %v389_v36, %s2870_s4 }
 0x266   : > { %499 = vrot.lane.b32.xlu0 %v496_v37, %s2870_s4 }
 0x2d6   : > { %v392_v42 = vpop.permute.xlu1 %391 }
 0x2d7   : > { %v394_v43 = vsel %vm318_vm2, %v392_v42, 0.0 }
 0x2d8   : > { %v395_v44 = vpack.c.bf16 %v394_v43, %v394_v43  ;;  %v500_v45 = vpop.permute.xlu0 %499 }
 0x2d9   : > { %2441 = vmatmul.mubr.msk.bf16.vlgmr.msra.gmra.mrb[4].mxu1 %vm318_vm2, %v500_v45 }
 0x2da   : > { %2433 = vmatmul.mubr.msk.bf16.vlgmr.msra.gmra.mrb[8].mxu0 %vm432_vm3, %v395_v44  ;;  %2452 = vmatprep.mubr.msk.bf16.mxu1 %vm2867_vm1, %v2866_v1 }
 0x2db   : > { %2457 = vmatpush3.bf16.msra.mxu0 %v2970_v28  ;;  %2464 = vmatprep.mubr.msk.bf16.mxu0 %vm2867_vm1, %v2866_v1 }
 0x2dc   : > { %2458 = vmatprep.subr.bf16.mxu0 %v2866_v1  ;;  %2445 = vmatpush3.bf16.msra.mxu1 %v3053_v16 }
 0x2dd   : > { %2446 = vmatprep.subr.bf16.mxu1 %v2866_v1 }
 0x2df   : > { %2459 = vmatpush3.bf16.msra.mxu0 %v2979_v31 }
 0x2e0   : > { %2460 = vmatprep.subr.bf16.mxu0 %v2866_v1  ;;  %2447 = vmatpush3.bf16.msra.mxu1 %v3059_v17 }
 0x2e1   : > { %2448 = vmatprep.subr.bf16.mxu1 %v2866_v1 }
 0x2e3   : > { %2461 = vmatpush3.bf16.msra.mxu0 %v2989_v32 }
 0x2e4   : > { %2462 = vmatprep.subr.bf16.mxu0 %v2866_v1  ;;  %2449 = vmatpush3.bf16.msra.mxu1 %v3068_v22 }
 0x2e5   : > { %2450 = vmatprep.subr.bf16.mxu1 %v2866_v1 }
 0x2e7   : > { %2463 = vmatpush3.bf16.msra.mxu0 %v2997_v34 }
 0x2e8   : > { %2476 = vmatprep.subr.bf16.mxu0 %v2866_v1  ;;  %2451 = vmatpush3.bf16.msra.mxu1 %v3076_v23 }
 0x2e9   : > { %2468 = vmatprep.subr.bf16.mxu1 %v2866_v1 }
 0x3ac   : > { %v538_v48 = vpop.f32.mrb[4].mxu1 }
 0x3ad   : > { %v539_v49 = vadd.f32 %v538_v48, %v266_v46  ;;  %v470_v50 = vpop.f32.mrb[8].mxu0  ;;  %v2442_v51 = vpop.f32.mrb[5].mxu1  ;;  %v3117_v48 = vld [vmem:[%s3620_s2 + $0x2] ss:$0 sm:$0xff] }
 0x3ae   : > { %v471_v52 = vadd.f32 %v3032_v47, %v470_v50  ;;  %v2434_v53 = vpop.f32.mrb[9].mxu0  ;;  %v541_v54 = vpop.f32.mrb[6].mxu1 }
 0x3af   : > { %2749 = vtanh.f32 %v539_v49  ;;  %v473_v55 = vpop.f32.mrb[10].mxu0  ;;  %v2443_v56 = vpop.f32.mrb[7].mxu1 }
 0x3b0   : > { %2751 = vtanh.f32 %v471_v52  ;;  %v2435_v57 = vpop.f32.mrb[11].mxu0 }
 0x3b9   : > { %v2750_v58 = vpop.eup %2749 }
 0x3ba   : > { %v2752_v59 = vpop.eup %2751  ;;  %v545_v60 = vmul.f32 %v2750_v58, %v2953_v18 }
 0x3bb   : > { %v477_v61 = vmul.f32 %v2752_v59, %v2953_v18  ;;  %v271_v59 = vadd.f32 %v2943_v9, %v2941_v7 }
 0x3bc   : > { %v546_v62 = vadd.f32 %v2958_v20, %v545_v60 }
 0x3bd   : > { %v478_v63 = vadd.f32 %v2958_v20, %v477_v61 }
 0x3be   : > { %549 = vrot.lane.b32.xlu0 %v546_v62, %s2869_s30  ;;  %v547_v8 = vmul.f32 %v546_v62, %v2964_v27 }
 0x3bf   : > { %481 = vrot.lane.b32.xlu1 %v478_v63, %s2869_s30  ;;  %v479_v11 = vmul.f32 0.0, %v478_v63 }
 0x430   : > { %v550_v2 = vpop.permute.xlu0 %549 }
 0x431   : > { %v552_v4 = vmul.f32 %v550_v2, %v546_v62  ;;  %v482_v5 = vpop.permute.xlu1 %481 }
 0x432   : > { %v484_v6 = vmul.f32 %v482_v5, %v478_v63 }
 0x433   : > { %554 = vrot.lane.b32.xlu0 %v552_v4, %s2870_s4 }
 0x434   : > { %486 = vrot.lane.b32.xlu1 %v484_v6, %s2870_s4 }
 0x4a5   : > { %v555_v10 = vpop.permute.xlu0 %554 }
 0x4a6   : > { %v3044_v12 = vadd.f32 %v555_v10, %v547_v8  ;;  %v487_v13 = vpop.permute.xlu1 %486 }
 0x4a7   : > { %v3046_v15 = vadd.f32 %v487_v13, %v479_v11 }
 0x4a8   : > { %2753 = vtanh.f32 %v3044_v12 }
 0x4a9   : > { %2755 = vtanh.f32 %v3046_v15 }
 0x4b2   : > { %v2754_v19 = vpop.eup %2753 }
 0x4b3   : > { %v2756_v21 = vpop.eup %2755  ;;  %560 = vrot.lane.b32.xlu0 %v2754_v19, %s2869_s30 }
 0x4b4   : > { %492 = vrot.lane.b32.xlu1 %v2756_v21, %s2869_s30 }
 0x525   : > { %v561_v24 = vpop.permute.xlu0 %560 }
 0x526   : > { %v563_v25 = vmul.f32 %v561_v24, %v546_v62  ;;  %v493_v26 = vpop.permute.xlu1 %492 }
 0x527   : > { %v495_v27 = vmul.f32 %v493_v26, %v478_v63 }
 0x528   : > { %v741_v30 = vpack.c.bf16 %v563_v25, %v563_v25 }
 0x529   : > { %v2693_v29 = vpack.i.bf16 %v563_v25, %v495_v27  ;;  %673 = vrot.lane.b32.xlu0 %v495_v27, %s2869_s30 }
 0x52b   : > { %2694 = vrot.lane.b32.xlu1 %v2693_v29, %s2870_s4 }
 0x52f   : > { %744 = vrot.lane.b32.xlu1 %v741_v30, %s2870_s4 }
 0x59b   : > { %v674_v37 = vpop.permute.xlu0 %673 }
 0x59d   : > { %v2695_v33 = vpop.permute.xlu1 %2694 }
 0x59e   : > { %v2697_v35 = vunpack.i.h.bf16 %v2695_v33  ;;  %v2696_v36 = vunpack.i.l.bf16 %v2695_v33 }
 0x5a0   : > { %v568_v42 = vsel %vm318_vm2, %v2696_v36, 0.0  ;;  %v676_v43 = vsel %vm318_vm2, %v2697_v35, %v674_v37 }
 0x5a1   : > { %v569_v44 = vpack.c.bf16 %v568_v42, %v568_v42  ;;  %v677_v45 = vpack.c.bf16 %v676_v43, %v676_v43  ;;  %v745_v46 = vpop.permute.xlu1 %744 }
 0x5a3   : > { %2453 = vmatmul.mubr.msk.bf16.vlgmr.msra.gmra.mrb[8].mxu1 %vm432_vm3, %v569_v44  ;;  %2465 = vmatmul.mubr.msk.bf16.vlgmr.msra.gmra.mrb[12].mxu0 %vm432_vm3, %v677_v45 }
 0x5a4   : > { %2469 = vmatpush3.bf16.msra.mxu1 %v2902_v0  ;;  %2472 = vmatprep.mubr.msk.bf16.mxu1 %vm2867_vm1, %v2866_v1 }
 0x5a5   : > { %2470 = vmatprep.subr.bf16.mxu1 %v2866_v1  ;;  %2477 = vmatpush3.bf16.msra.mxu0 %v3053_v16 }
 0x5a6   : > { %2478 = vmatprep.subr.bf16.mxu0 %v2866_v1  ;;  %2484 = vmatprep.mubr.msk.bf16.mxu0 %vm2867_vm1, %v2866_v1 }
 0x5a8   : > { %2471 = vmatpush3.bf16.msra.mxu1 %v2912_v3 }
 0x5a9   : > { %2479 = vmatpush3.bf16.msra.mxu0 %v3059_v17  ;;  %2488 = vmatprep.subr.bf16.mxu1 %v2866_v1 }
 0x5aa   : > { %2480 = vmatprep.subr.bf16.mxu0 %v2866_v1 }
 0x5ab   : > { %2473 = vmatmul.mubr.msk.bf16.vlgmr.msra.gmra.mrb[12].mxu1 %vm318_vm2, %v745_v46 }
 0x5ac   : > { %2489 = vmatpush3.bf16.msra.mxu1 %v2970_v28  ;;  %2496 = vmatprep.mubr.msk.bf16.mxu1 %vm2867_vm1, %v2866_v1 }
 0x5ad   : > { %2481 = vmatpush3.bf16.msra.mxu0 %v3068_v22  ;;  %2490 = vmatprep.subr.bf16.mxu1 %v2866_v1 }
 0x5ae   : > { %2482 = vmatprep.subr.bf16.mxu0 %v2866_v1 }
 0x5b0   : > { %2491 = vmatpush3.bf16.msra.mxu1 %v2979_v31 }
 0x5b1   : > { %2483 = vmatpush3.bf16.msra.mxu0 %v3076_v23  ;;  %2492 = vmatprep.subr.bf16.mxu1 %v2866_v1 }
 0x5b2   : > { %2500 = vmatprep.subr.bf16.mxu0 %v2866_v1 }
 0x5b4   : > { %2493 = vmatpush3.bf16.msra.mxu1 %v2989_v32 }
 0x5b5   : > { %2494 = vmatprep.subr.bf16.mxu1 %v2866_v1 }
 0x5b8   : > { %2495 = vmatpush3.bf16.msra.mxu1 %v2997_v34 }
 0x5b9   : > { %2508 = vmatprep.subr.bf16.mxu1 %v2866_v1 }
 0x676   : > { %v643_v49 = vpop.f32.mrb[8].mxu1  ;;  %v715_v50 = vpop.f32.mrb[12].mxu0 }
 0x677   : > { %v644_v51 = vadd.f32 %v3117_v48, %v643_v49  ;;  %v716_v52 = vadd.f32 %v3032_v47, %v715_v50  ;;  %v2454_v53 = vpop.f32.mrb[9].mxu1  ;;  %v2466_v54 = vpop.f32.mrb[13].mxu0 }
 0x678   : > { %v646_v55 = vpop.f32.mrb[10].mxu1  ;;  %v718_v56 = vpop.f32.mrb[14].mxu0 }
 0x679   : > { %2757 = vtanh.f32 %v644_v51  ;;  %v2455_v57 = vpop.f32.mrb[11].mxu1  ;;  %v2467_v58 = vpop.f32.mrb[15].mxu0 }
 0x67a   : > { %2759 = vtanh.f32 %v716_v52 }
 0x67e   : > { %v783_v60 = vpop.f32.mrb[12].mxu1 }
 0x67f   : > { %v784_v61 = vadd.f32 %v783_v60, %v271_v59  ;;  %v2474_v62 = vpop.f32.mrb[13].mxu1 }
 0x680   : > { %v786_v63 = vpop.f32.mrb[14].mxu1 }
 0x681   : > { %2761 = vtanh.f32 %v784_v61  ;;  %v2475_v2 = vpop.f32.mrb[15].mxu1 }
 0x683   : > { %v2758_v4 = vpop.eup %2757 }
 0x684   : > { %v2760_v5 = vpop.eup %2759  ;;  %v650_v6 = vmul.f32 %v2758_v4, %v2953_v18 }
 0x685   : > { %v722_v8 = vmul.f32 %v2760_v5, %v2953_v18 }
 0x686   : > { %v651_v10 = vadd.f32 %v2958_v20, %v650_v6 }
 0x687   : > { %v723_v11 = vadd.f32 %v2958_v20, %v722_v8 }
 0x688   : > { %654 = vrot.lane.b32.xlu0 %v651_v10, %s2869_s30  ;;  %v652_v30 = vmul.f32 0.0, %v651_v10 }
 0x689   : > { %726 = vrot.lane.b32.xlu1 %v723_v11, %s2869_s30  ;;  %v724_v35 = vmul.f32 %v723_v11, %v3046_v15 }
 0x68b   : > { %v2762_v9 = vpop.eup %2761 }
 0x68c   : > { %v790_v13 = vmul.f32 %v2762_v9, %v2953_v18 }
 0x68e   : > { %v791_v19 = vadd.f32 %v2958_v20, %v790_v13 }
 0x690   : > { %794 = vrot.lane.b32.xlu0 %v791_v19, %s2869_s30  ;;  %v792_v43 = vmul.f32 %v791_v19, %v3044_v12 }
 0x6fa   : > { %v655_v21 = vpop.permute.xlu0 %654 }
 0x6fb   : > { %v727_v24 = vpop.permute.xlu1 %726  ;;  %v657_v25 = vmul.f32 %v655_v21, %v651_v10 }
 0x6fc   : > { %v729_v26 = vmul.f32 %v727_v24, %v723_v11 }
 0x6fd   : > { %659 = vrot.lane.b32.xlu1 %v657_v25, %s2870_s4 }
 0x6fe   : > { %731 = vrot.lane.b32.xlu0 %v729_v26, %s2870_s4 }
 0x702   : > { %v795_v27 = vpop.permute.xlu0 %794 }
 0x703   : > { %v797_v29 = vmul.f32 %v795_v27, %v791_v19 }
 0x705   : > { %799 = vrot.lane.b32.xlu1 %v797_v29, %s2870_s4 }
 0x76f   : > { %v660_v33 = vpop.permute.xlu1 %659 }
 0x770   : > { %v3136_v36 = vadd.f32 %v660_v33, %v652_v30  ;;  %v732_v37 = vpop.permute.xlu0 %731 }
 0x771   : > { %v3138_v42 = vadd.f32 %v732_v37, %v724_v35 }
 0x772   : > { %2763 = vtanh.f32 %v3136_v36 }
 0x773   : > { %2765 = vtanh.f32 %v3138_v42 }
 0x777   : > { %v800_v44 = vpop.permute.xlu1 %799 }
 0x778   : > { %v3143_v45 = vadd.f32 %v800_v44, %v792_v43 }
 0x77a   : > { %2767 = vtanh.f32 %v3143_v45 }
 0x77c   : > { %v2764_v46 = vpop.eup %2763 }
 0x77d   : > { %v2766_v49 = vpop.eup %2765  ;;  %665 = vrot.lane.b32.xlu0 %v2764_v46, %s2869_s30 }
 0x77e   : > { %737 = vrot.lane.b32.xlu1 %v2766_v49, %s2869_s30 }
 0x784   : > { %v2768_v15 = vpop.eup %2767 }
 0x785   : > { %805 = vrot.lane.b32.xlu0 %v2768_v15, %s2869_s30 }
 0x7ef   : > { %v666_v50 = vpop.permute.xlu0 %665 }
 0x7f0   : > { %v738_v51 = vpop.permute.xlu1 %737  ;;  %v668_v52 = vmul.f32 %v666_v50, %v651_v10 }
 0x7f1   : > { %v740_v53 = vmul.f32 %v738_v51, %v723_v11  ;;  %v274_v11 = vadd.f32 %v2946_v14, %v2941_v7 }
 0x7f2   : > { %814 = vrot.lane.b32.xlu0 %v668_v52, %s2869_s30 }
 0x7f3   : > { %810 = vrot.lane.b32.xlu1 %v740_v53, %s2870_s4 }
 0x7f6   : > { %886 = vrot.lane.b32.xlu0 %v740_v53, %s2869_s30 }
 0x7f7   : > { %v806_v12 = vpop.permute.xlu0 %805 }
 0x7f8   : > { %v808_v54 = vmul.f32 %v806_v12, %v791_v19 }
 0x7fa   : > { %883 = vrot.lane.b32.xlu1 %v808_v54, %s2870_s4  ;;  %v954_v55 = vpack.c.bf16 %v808_v54, %v808_v54 }
 0x7fe   : > { %957 = vrot.lane.b32.xlu1 %v954_v55, %s2870_s4 }
 0x864   : > { %v815_v56 = vpop.permute.xlu0 %814 }
 0x865   : > { %v811_v57 = vpop.permute.xlu1 %810 }
 0x866   : > { %v817_v58 = vsel %vm318_vm2, %v811_v57, %v815_v56 }
 0x867   : > { %v818_v59 = vpack.c.bf16 %v817_v58, %v817_v58 }
 0x868   : > { %v887_v60 = vpop.permute.xlu0 %886 }
 0x869   : > { %2485 = vmatmul.mubr.msk.bf16.vlgmr.msra.gmra.mrb[16].mxu0 %vm432_vm3, %v818_v59 }
 0x86a   : > { %2501 = vmatpush3.bf16.msra.mxu0 %v2902_v0  ;;  %2504 = vmatprep.mubr.msk.bf16.mxu0 %vm2867_vm1, %v2866_v1 }
 0x86b   : > { %2502 = vmatprep.subr.bf16.mxu0 %v2866_v1 }
 0x86c   : > { %v884_v61 = vpop.permute.xlu1 %883 }
 0x86d   : > { %v889_v62 = vsel %vm318_vm2, %v884_v61, %v887_v60 }
 0x86e   : > { %v890_v63 = vpack.c.bf16 %v889_v62, %v889_v62  ;;  %2503 = vmatpush3.bf16.msra.mxu0 %v2912_v3 }
 0x86f   : > { %2520 = vmatprep.subr.bf16.mxu0 %v2866_v1 }
 0x870   : > { %v958_v2 = vpop.permute.xlu1 %957  ;;  %2497 = vmatmul.mubr.msk.bf16.vlgmr.msra.gmra.mrb[16].mxu1 %vm432_vm3, %v890_v63 }
 0x871   : > { %2505 = vmatmul.mubr.msk.bf16.vlgmr.msra.gmra.mrb[20].mxu0 %vm318_vm2, %v958_v2  ;;  %2509 = vmatpush3.bf16.msra.mxu1 %v3053_v16 }
 0x872   : > { %2521 = vmatpush3.bf16.msra.mxu0 %v2970_v28  ;;  %2510 = vmatprep.subr.bf16.mxu1 %v2866_v1 }
 0x873   : > { %2522 = vmatprep.subr.bf16.mxu0 %v2866_v1  ;;  %2516 = vmatprep.mubr.msk.bf16.mxu1 %vm2867_vm1, %v2866_v1 }
 0x874   : > { %2528 = vmatprep.mubr.msk.bf16.mxu0 %vm2867_vm1, %v2866_v1 }
 0x875   : > { %2511 = vmatpush3.bf16.msra.mxu1 %v3059_v17 }
 0x876   : > { %2523 = vmatpush3.bf16.msra.mxu0 %v2979_v31  ;;  %2512 = vmatprep.subr.bf16.mxu1 %v2866_v1 }
 0x877   : > { %2524 = vmatprep.subr.bf16.mxu0 %v2866_v1 }
 0x879   : > { %2513 = vmatpush3.bf16.msra.mxu1 %v3068_v22 }
 0x87a   : > { %2525 = vmatpush3.bf16.msra.mxu0 %v2989_v32  ;;  %2514 = vmatprep.subr.bf16.mxu1 %v2866_v1 }
 0x87b   : > { %2526 = vmatprep.subr.bf16.mxu0 %v2866_v1 }
 0x87d   : > { %2515 = vmatpush3.bf16.msra.mxu1 %v3076_v23 }
 0x87e   : > { %2527 = vmatpush3.bf16.msra.mxu0 %v2997_v34  ;;  %2532 = vmatprep.subr.bf16.mxu1 %v2866_v1 }
 0x87f   : > { %2540 = vmatprep.subr.bf16.mxu0 %v2866_v1 }
 0x93c   : > { %v856_v4 = vpop.f32.mrb[16].mxu0 }
 0x93d   : > { %v857_v5 = vadd.f32 %v3117_v48, %v856_v4  ;;  %v2486_v6 = vpop.f32.mrb[17].mxu0 }
 0x93e   : > { %v859_v8 = vpop.f32.mrb[18].mxu0 }
 0x93f   : > { %2769 = vtanh.f32 %v857_v5  ;;  %v2487_v10 = vpop.f32.mrb[19].mxu0 }
 0x943   : > { %v928_v9 = vpop.f32.mrb[16].mxu1 }
 0x944   : > { %v929_v13 = vadd.f32 %v3032_v47, %v928_v9  ;;  %v2498_v19 = vpop.f32.mrb[17].mxu1  ;;  %v996_v21 = vpop.f32.mrb[20].mxu0 }
 0x945   : > { %v997_v24 = vadd.f32 %v996_v21, %v274_v11  ;;  %v931_v25 = vpop.f32.mrb[18].mxu1  ;;  %v2506_v26 = vpop.f32.mrb[21].mxu0 }
 0x946   : > { %2771 = vtanh.f32 %v929_v13  ;;  %v2499_v27 = vpop.f32.mrb[19].mxu1  ;;  %v999_v29 = vpop.f32.mrb[22].mxu0 }
 0x947   : > { %2773 = vtanh.f32 %v997_v24  ;;  %v2507_v30 = vpop.f32.mrb[23].mxu0 }
 0x949   : > { %v2770_v33 = vpop.eup %2769 }
 0x94a   : > { %v863_v35 = vmul.f32 %v2770_v33, %v2953_v18 }
 0x94c   : > { %v864_v37 = vadd.f32 %v2958_v20, %v863_v35 }
 0x94e   : > { %867 = vrot.lane.b32.xlu0 %v864_v37, %s2869_s30  ;;  %v865_v55 = vmul.f32 %v864_v37, %v3136_v36 }
 0x950   : > { %v2772_v14 = vpop.eup %2771 }
 0x951   : > { %v2774_v43 = vpop.eup %2773  ;;  %v935_v44 = vmul.f32 %v2772_v14, %v2953_v18 }
 0x952   : > { %v1003_v46 = vmul.f32 %v2774_v43, %v2953_v18 }
 0x953   : > { %v936_v49 = vadd.f32 %v2958_v20, %v935_v44 }
 0x954   : > { %v1004_v15 = vadd.f32 %v2958_v20, %v1003_v46 }
 0x955   : > { %939 = vrot.lane.b32.xlu1 %v936_v49, %s2869_s30  ;;  %v937_v58 = vmul.f32 %v936_v49, %v3138_v42 }
 0x956   : > { %1007 = vrot.lane.b32.xlu0 %v1004_v15, %s2869_s30  ;;  %v1005_v60 = vmul.f32 %v1004_v15, %v3143_v45 }
 0x9c0   : > { %v868_v50 = vpop.permute.xlu0 %867 }
 0x9c1   : > { %v870_v51 = vmul.f32 %v868_v50, %v864_v37 }
 0x9c3   : > { %872 = vrot.lane.b32.xlu1 %v870_v51, %s2870_s4 }
 0x9c7   : > { %v940_v52 = vpop.permute.xlu1 %939 }
 0x9c8   : > { %v942_v53 = vmul.f32 %v940_v52, %v936_v49  ;;  %v1008_v12 = vpop.permute.xlu0 %1007  ;;  %v279_v52 = vadd.f32 %v2941_v7, %v3006_v39 }
 0x9c9   : > { %v1010_v54 = vmul.f32 %v1008_v12, %v1004_v15 }
 0x9ca   : > { %944 = vrot.lane.b32.xlu0 %v942_v53, %s2870_s4 }
 0x9cb   : > { %1012 = vrot.lane.b32.xlu1 %v1010_v54, %s2870_s4 }
 0xa35   : > { %v873_v56 = vpop.permute.xlu1 %872 }
 0xa36   : > { %v3202_v57 = vadd.f32 %v873_v56, %v865_v55 }
 0xa38   : > { %2775 = vtanh.f32 %v3202_v57 }
 0xa3c   : > { %v945_v59 = vpop.permute.xlu0 %944 }
 0xa3d   : > { %v3207_v61 = vadd.f32 %v945_v59, %v937_v58  ;;  %v1013_v62 = vpop.permute.xlu1 %1012 }
 0xa3e   : > { %v3209_v63 = vadd.f32 %v1013_v62, %v1005_v60 }
 0xa3f   : > { %2777 = vtanh.f32 %v3207_v61 }
 0xa40   : > { %2779 = vtanh.f32 %v3209_v63 }
 0xa42   : > { %v2776_v36 = vpop.eup %2775 }
 0xa43   : > { %878 = vrot.lane.b32.xlu0 %v2776_v36, %s2869_s30 }
 0xa49   : > { %v2778_v2 = vpop.eup %2777 }
 0xa4a   : > { %v2780_v4 = vpop.eup %2779  ;;  %950 = vrot.lane.b32.xlu1 %v2778_v2, %s2869_s30 }
 0xa4b   : > { %1018 = vrot.lane.b32.xlu0 %v2780_v4, %s2869_s30 }
 0xab5   : > { %v879_v42 = vpop.permute.xlu0 %878 }
 0xab6   : > { %v881_v5 = vmul.f32 %v879_v42, %v864_v37 }
 0xabc   : > { %v951_v45 = vpop.permute.xlu1 %950 }
 0xabd   : > { %v953_v6 = vmul.f32 %v951_v45, %v936_v49  ;;  %v1019_v8 = vpop.permute.xlu0 %1018 }
 0xabe   : > { %v1021_v10 = vmul.f32 %v1019_v8, %v1004_v15 }
 0xabf   : > { %v2703_v11 = vpack.i.bf16 %v953_v6, %v881_v5 }
 0xac0   : > { %v2698_v9 = vpack.i.bf16 %v1021_v10, %v953_v6  ;;  %v1167_v13 = vpack.c.bf16 %v1021_v10, %v1021_v10 }
 0xac1   : > { %2704 = vrot.lane.b32.xlu0 %v2703_v11, %s2869_s30 }
 0xac2   : > { %2699 = vrot.lane.b32.xlu1 %v2698_v9, %s2870_s4 }
 0xac6   : > { %1170 = vrot.lane.b32.xlu1 %v1167_v13, %s2870_s4 }
 0xb33   : > { %v2705_v19 = vpop.permute.xlu0 %2704 }
 0xb34   : > { %v2707_v21 = vunpack.i.h.bf16 %v2705_v19  ;;  %v2706_v24 = vunpack.i.l.bf16 %v2705_v19  ;;  %v2700_v25 = vpop.permute.xlu1 %2699 }
 0xb35   : > { %v2702_v26 = vunpack.i.h.bf16 %v2700_v25  ;;  %v2701_v27 = vunpack.i.l.bf16 %v2700_v25 }
 0xb37   : > { %v1102_v29 = vsel %vm318_vm2, %v2702_v26, %v2707_v21  ;;  %v1030_v30 = vsel %vm318_vm2, %v2701_v27, %v2706_v24 }
 0xb38   : > { %v1103_v33 = vpack.c.bf16 %v1102_v29, %v1102_v29  ;;  %v1031_v35 = vpack.c.bf16 %v1030_v30, %v1030_v30  ;;  %v1171_v37 = vpop.permute.xlu1 %1170 }
 0xb3a   : > { %2517 = vmatmul.mubr.msk.bf16.vlgmr.msra.gmra.mrb[20].mxu1 %vm432_vm3, %v1031_v35  ;;  %2529 = vmatmul.mubr.msk.bf16.vlgmr.msra.gmra.mrb[24].mxu0 %vm432_vm3, %v1103_v33 }
 0xb3b   : > { %2533 = vmatpush3.bf16.msra.mxu1 %v2902_v0  ;;  %2536 = vmatprep.mubr.msk.bf16.mxu1 %vm2867_vm1, %v2866_v1 }
 0xb3c   : > { %2534 = vmatprep.subr.bf16.mxu1 %v2866_v1  ;;  %2541 = vmatpush3.bf16.msra.mxu0 %v3053_v16 }
 0xb3d   : > { %2542 = vmatprep.subr.bf16.mxu0 %v2866_v1  ;;  %2548 = vmatprep.mubr.msk.bf16.mxu0 %vm2867_vm1, %v2866_v1 }
 0xb3f   : > { %2535 = vmatpush3.bf16.msra.mxu1 %v2912_v3 }
 0xb40   : > { %2543 = vmatpush3.bf16.msra.mxu0 %v3059_v17  ;;  %2552 = vmatprep.subr.bf16.mxu1 %v2866_v1 }
 0xb41   : > { %2544 = vmatprep.subr.bf16.mxu0 %v2866_v1 }
 0xb42   : > { %2537 = vmatmul.mubr.msk.bf16.vlgmr.msra.gmra.mrb[24].mxu1 %vm318_vm2, %v1171_v37 }
 0xb43   : > { %2553 = vmatpush3.bf16.msra.mxu1 %v2970_v28  ;;  %2560 = vmatprep.mubr.msk.bf16.mxu1 %vm2867_vm1, %v2866_v1 }
 0xb44   : > { %2545 = vmatpush3.bf16.msra.mxu0 %v3068_v22  ;;  %2554 = vmatprep.subr.bf16.mxu1 %v2866_v1 }
 0xb45   : > { %2546 = vmatprep.subr.bf16.mxu0 %v2866_v1 }
 0xb47   : > { %2555 = vmatpush3.bf16.msra.mxu1 %v2979_v31 }
 0xb48   : > { %2547 = vmatpush3.bf16.msra.mxu0 %v3076_v23  ;;  %2556 = vmatprep.subr.bf16.mxu1 %v2866_v1 }
 0xb49   : > { %2564 = vmatprep.subr.bf16.mxu0 %v2866_v1 }
 0xb4b   : > { %2557 = vmatpush3.bf16.msra.mxu1 %v2989_v32 }
 0xb4c   : > { %2558 = vmatprep.subr.bf16.mxu1 %v2866_v1 }
 0xb4f   : > { %2559 = vmatpush3.bf16.msra.mxu1 %v2997_v34 }
 0xb50   : > { %2572 = vmatprep.subr.bf16.mxu1 %v2866_v1 }
 0xc0d   : > { %v1069_v0 = vpop.f32.mrb[20].mxu1  ;;  %v1141_v3 = vpop.f32.mrb[24].mxu0 }
 0xc0e   : > { %v1070_v14 = vadd.f32 %v3117_v48, %v1069_v0  ;;  %v1142_v43 = vadd.f32 %v3032_v47, %v1141_v3  ;;  %v2518_v44 = vpop.f32.mrb[21].mxu1  ;;  %v2530_v46 = vpop.f32.mrb[25].mxu0 }
 0xc0f   : > { %v1072_v49 = vpop.f32.mrb[22].mxu1  ;;  %v1144_v15 = vpop.f32.mrb[26].mxu0 }
 0xc10   : > { %2781 = vtanh.f32 %v1070_v14  ;;  %v2519_v50 = vpop.f32.mrb[23].mxu1  ;;  %v2531_v51 = vpop.f32.mrb[27].mxu0  ;;  %v3291_v15 = vld [vmem:[%s3619_s1 + $0x8] sm:$0xff]  }
 0xc11   : > { %2783 = vtanh.f32 %v1142_v43 }
 0xc15   : > { %v1209_v53 = vpop.f32.mrb[24].mxu1 }
 0xc16   : > { %v1210_v12 = vadd.f32 %v1209_v53, %v279_v52  ;;  %v2538_v54 = vpop.f32.mrb[25].mxu1 }
 0xc17   : > { %v1212_v55 = vpop.f32.mrb[26].mxu1 }
 0xc18   : > { %2785 = vtanh.f32 %v1210_v12  ;;  %v2539_v56 = vpop.f32.mrb[27].mxu1  ;;  %v3301_v12 = vld [vmem:[%s3619_s1 + $0x10] sm:$0xff]  }
 0xc1a   : > { %v2782_v58 = vpop.eup %2781 }
 0xc1b   : > { %v2784_v59 = vpop.eup %2783  ;;  %v1076_v60 = vmul.f32 %v2782_v58, %v2953_v18 }
 0xc1c   : > { %v1148_v62 = vmul.f32 %v2784_v59, %v2953_v18 }
 0xc1d   : > { %v1077_v36 = vadd.f32 %v2958_v20, %v1076_v60 }
 0xc1e   : > { %v1149_v2 = vadd.f32 %v2958_v20, %v1148_v62 }
 0xc1f   : > { %1080 = vrot.lane.b32.xlu0 %v1077_v36, %s2869_s30  ;;  %v1078_v9 = vmul.f32 %v1077_v36, %v3202_v57 }
 0xc20   : > { %1152 = vrot.lane.b32.xlu1 %v1149_v2, %s2869_s30  ;;  %v1150_v19 = vmul.f32 %v1149_v2, %v3207_v61 }
 0xc22   : > { %v2786_v39 = vpop.eup %2785 }
 0xc23   : > { %v1216_v4 = vmul.f32 %v2786_v39, %v2953_v18 }
 0xc25   : > { %v1217_v42 = vadd.f32 %v2958_v20, %v1216_v4 }
 0xc27   : > { %1220 = vrot.lane.b32.xlu0 %v1217_v42, %s2869_s30  ;;  %v1218_v26 = vmul.f32 %v1217_v42, %v3209_v63 }
 0xc91   : > { %v1081_v45 = vpop.permute.xlu0 %1080 }
 0xc92   : > { %v1153_v5 = vpop.permute.xlu1 %1152  ;;  %v1083_v6 = vmul.f32 %v1081_v45, %v1077_v36 }
 0xc93   : > { %v1155_v8 = vmul.f32 %v1153_v5, %v1149_v2 }
 0xc94   : > { %1085 = vrot.lane.b32.xlu1 %v1083_v6, %s2870_s4 }
 0xc95   : > { %1157 = vrot.lane.b32.xlu0 %v1155_v8, %s2870_s4 }
 0xc99   : > { %v1221_v10 = vpop.permute.xlu0 %1220 }
 0xc9a   : > { %v1223_v11 = vmul.f32 %v1221_v10, %v1217_v42 }
 0xc9c   : > { %1225 = vrot.lane.b32.xlu1 %v1223_v11, %s2870_s4 }
 0xd06   : > { %v1086_v13 = vpop.permute.xlu1 %1085 }
 0xd07   : > { %v3268_v21 = vadd.f32 %v1086_v13, %v1078_v9  ;;  %v1158_v24 = vpop.permute.xlu0 %1157 }
 0xd08   : > { %v3270_v25 = vadd.f32 %v1158_v24, %v1150_v19 }
 0xd09   : > { %2787 = vtanh.f32 %v3268_v21 }
 0xd0a   : > { %2789 = vtanh.f32 %v3270_v25 }
 0xd0e   : > { %v1226_v27 = vpop.permute.xlu1 %1225 }
 0xd0f   : > { %v3275_v29 = vadd.f32 %v1226_v27, %v1218_v26 }
 0xd11   : > { %2791 = vtanh.f32 %v3275_v29 }
 0xd13   : > { %v2788_v57 = vpop.eup %2787 }
 0xd14   : > { %v2790_v30 = vpop.eup %2789  ;;  %1091 = vrot.lane.b32.xlu0 %v2788_v57, %s2869_s30 }
 0xd15   : > { %1163 = vrot.lane.b32.xlu1 %v2790_v30, %s2869_s30 }
 0xd1b   : > { %v2792_v61 = vpop.eup %2791 }
 0xd1c   : > { %1231 = vrot.lane.b32.xlu0 %v2792_v61, %s2869_s30 }
 0xd86   : > { %v1092_v33 = vpop.permute.xlu0 %1091 }
 0xd87   : > { %v1164_v35 = vpop.permute.xlu1 %1163  ;;  %v1094_v37 = vmul.f32 %v1092_v33, %v1077_v36 }
 0xd88   : > { %v1166_v0 = vmul.f32 %v1164_v35, %v1149_v2 }
 0xd89   : > { %1240 = vrot.lane.b32.xlu0 %v1094_v37, %s2869_s30 }
 0xd8a   : > { %1236 = vrot.lane.b32.xlu1 %v1166_v0, %s2870_s4 }
 0xd8d   : > { %1312 = vrot.lane.b32.xlu0 %v1166_v0, %s2869_s30 }
 0xd8e   : > { %v1232_v63 = vpop.permute.xlu0 %1231 }
 0xd8f   : > { %v1234_v3 = vmul.f32 %v1232_v63, %v1217_v42 }
 0xd91   : > { %1309 = vrot.lane.b32.xlu1 %v1234_v3, %s2870_s4  ;;  %v1380_v14 = vpack.c.bf16 %v1234_v3, %v1234_v3 }
 0xd95   : > { %1383 = vrot.lane.b32.xlu1 %v1380_v14, %s2870_s4 }
 0xdfb   : > { %v1241_v43 = vpop.permute.xlu0 %1240 }
 0xdfc   : > { %v1237_v44 = vpop.permute.xlu1 %1236 }
 0xdfd   : > { %v1243_v46 = vsel %vm318_vm2, %v1237_v44, %v1241_v43 }
 0xdfe   : > { %v1244_v49 = vpack.c.bf16 %v1243_v46, %v1243_v46 }
 0xdff   : > { %v1313_v50 = vpop.permute.xlu0 %1312 }
 0xe00   : > { %2549 = vmatmul.mubr.msk.bf16.vlgmr.msra.gmra.mrb[28].mxu0 %vm432_vm3, %v1244_v49 }
 0xe01   : > { %2565 = vmatpush3.bf16.msra.mxu0 %v3291_v15  ;;  %2568 = vmatprep.mubr.msk.bf16.mxu0 %vm2867_vm1, %v2866_v1 }
 0xe02   : > { %2566 = vmatprep.subr.bf16.mxu0 %v2866_v1 }
 0xe03   : > { %v1310_v51 = vpop.permute.xlu1 %1309 }
 0xe04   : > { %v1315_v52 = vsel %vm318_vm2, %v1310_v51, %v1313_v50 }
 0xe05   : > { %v1316_v53 = vpack.c.bf16 %v1315_v52, %v1315_v52  ;;  %2567 = vmatpush3.bf16.msra.mxu0 %v3301_v12 }
 0xe06   : > { %2584 = vmatprep.subr.bf16.mxu0 %v2866_v1 }
 0xe07   : > { %v1384_v54 = vpop.permute.xlu1 %1383  ;;  %2561 = vmatmul.mubr.msk.bf16.vlgmr.msra.gmra.mrb[28].mxu1 %vm432_vm3, %v1316_v53 }
 0xe08   : > { %2569 = vmatmul.mubr.msk.bf16.vlgmr.msra.gmra.mrb[32].mxu0 %vm318_vm2, %v1384_v54  ;;  %2573 = vmatpush3.bf16.msra.mxu1 %v3053_v16 }
 0xe09   : > { %2585 = vmatpush3.bf16.msra.mxu0 %v2970_v28  ;;  %2574 = vmatprep.subr.bf16.mxu1 %v2866_v1 }
 0xe0a   : > { %2586 = vmatprep.subr.bf16.mxu0 %v2866_v1  ;;  %2580 = vmatprep.mubr.msk.bf16.mxu1 %vm2867_vm1, %v2866_v1 }
 0xe0b   : > { %2592 = vmatprep.mubr.msk.bf16.mxu0 %vm2867_vm1, %v2866_v1 }
 0xe0c   : > { %2575 = vmatpush3.bf16.msra.mxu1 %v3059_v17 }
 0xe0d   : > { %2587 = vmatpush3.bf16.msra.mxu0 %v2979_v31  ;;  %2576 = vmatprep.subr.bf16.mxu1 %v2866_v1 }
 0xe0e   : > { %2588 = vmatprep.subr.bf16.mxu0 %v2866_v1 }
 0xe10   : > { %2577 = vmatpush3.bf16.msra.mxu1 %v3068_v22 }
 0xe11   : > { %2589 = vmatpush3.bf16.msra.mxu0 %v2989_v32  ;;  %2578 = vmatprep.subr.bf16.mxu1 %v2866_v1  ;;  %v282_v32 = vadd.f32 %v2941_v7, %v3010_v41 }
 0xe12   : > { %2590 = vmatprep.subr.bf16.mxu0 %v2866_v1 }
 0xe14   : > { %2579 = vmatpush3.bf16.msra.mxu1 %v3076_v23 }
 0xe15   : > { %2591 = vmatpush3.bf16.msra.mxu0 %v2997_v34  ;;  %2596 = vmatprep.subr.bf16.mxu1 %v2866_v1 }
 0xe16   : > { %2604 = vmatprep.subr.bf16.mxu0 %v2866_v1 }
 0xed3   : > { %v1282_v28 = vpop.f32.mrb[28].mxu0 }
 0xed4   : > { %v1283_v31 = vadd.f32 %v3117_v48, %v1282_v28  ;;  %v2550_v55 = vpop.f32.mrb[29].mxu0 }
 0xed5   : > { %v1285_v56 = vpop.f32.mrb[30].mxu0 }
 0xed6   : > { %2793 = vtanh.f32 %v1283_v31  ;;  %v2551_v58 = vpop.f32.mrb[31].mxu0 }
 0xeda   : > { %v1354_v59 = vpop.f32.mrb[28].mxu1 }
 0xedb   : > { %v1355_v60 = vadd.f32 %v3032_v47, %v1354_v59  ;;  %v2562_v62 = vpop.f32.mrb[29].mxu1  ;;  %v1422_v36 = vpop.f32.mrb[32].mxu0 }
 0xedc   : > { %v1423_v34 = vadd.f32 %v1422_v36, %v282_v32  ;;  %v1357_v2 = vpop.f32.mrb[30].mxu1  ;;  %v2570_v39 = vpop.f32.mrb[33].mxu0  ;;  %v3408_v36 = vld [vmem:[%s3619_s1 + $0x30] sm:$0xff]  }
 0xedd   : > { %2795 = vtanh.f32 %v1355_v60  ;;  %v2563_v4 = vpop.f32.mrb[31].mxu1  ;;  %v1425_v42 = vpop.f32.mrb[34].mxu0  ;;  %v3416_v39 = vld [vmem:[%s3620_s2 + $0x1] ss:$0 sm:$0xff] }
 0xede   : > { %2797 = vtanh.f32 %v1423_v34  ;;  %v2571_v45 = vpop.f32.mrb[35].mxu0 }
 0xee0   : > { %v2794_v5 = vpop.eup %2793 }
 0xee1   : > { %v1289_v6 = vmul.f32 %v2794_v5, %v2953_v18 }
 0xee3   : > { %v1290_v8 = vadd.f32 %v2958_v20, %v1289_v6 }
 0xee5   : > { %1293 = vrot.lane.b32.xlu0 %v1290_v8, %s2869_s30 }
 0xee7   : > { %v2796_v7 = vpop.eup %2795 }
 0xee8   : > { %v2798_v41 = vpop.eup %2797  ;;  %v1361_v47 = vmul.f32 %v2796_v7, %v2953_v18 }
 0xee9   : > { %v1429_v10 = vmul.f32 %v2798_v41, %v2953_v18  ;;  %v1291_v18 = vmul.f32 %v1290_v8, %v3268_v21  ;;  %v3422_v41 = vld [vmem:[%s3620_s2] ss:$0 sm:$0xff] }
 0xeea   : > { %v1362_v11 = vadd.f32 %v2958_v20, %v1361_v47 }
 0xeeb   : > { %v1430_v9 = vadd.f32 %v2958_v20, %v1429_v10 }
 0xeec   : > { %1365 = vrot.lane.b32.xlu1 %v1362_v11, %s2869_s30  ;;  %v1363_v61 = vmul.f32 %v1362_v11, %v3270_v25 }
 0xeed   : > { %1433 = vrot.lane.b32.xlu0 %v1430_v9, %s2869_s30  ;;  %v1431_v35 = vmul.f32 %v1430_v9, %v3275_v29 }
 0xf57   : > { %v1294_v13 = vpop.permute.xlu0 %1293 }
 0xf58   : > { %v1296_v19 = vmul.f32 %v1294_v13, %v1290_v8 }
 0xf5a   : > { %1298 = vrot.lane.b32.xlu1 %v1296_v19, %s2870_s4 }
 0xf5e   : > { %v1366_v24 = vpop.permute.xlu1 %1365 }
 0xf5f   : > { %v1368_v26 = vmul.f32 %v1366_v24, %v1362_v11  ;;  %v1434_v27 = vpop.permute.xlu0 %1433 }
 0xf60   : > { %v1436_v57 = vmul.f32 %v1434_v27, %v1430_v9 }
 0xf61   : > { %1370 = vrot.lane.b32.xlu0 %v1368_v26, %s2870_s4  ;;  %v3429_v26 = vld [vmem:[%s3620_s2 + $0x6] ss:$0 sm:$0xff] }
 0xf62   : > { %1438 = vrot.lane.b32.xlu1 %v1436_v57, %s2870_s4 }
 0xfcc   : > { %v1299_v30 = vpop.permute.xlu1 %1298 }
 0xfcd   : > { %v3344_v20 = vadd.f32 %v1299_v30, %v1291_v18 }
 0xfcf   : > { %2799 = vtanh.f32 %v3344_v20 }
 0xfd3   : > { %v1371_v33 = vpop.permute.xlu0 %1370 }
 0xfd4   : > { %v3349_v37 = vadd.f32 %v1371_v33, %v1363_v61  ;;  %v1439_v0 = vpop.permute.xlu1 %1438 }
 0xfd5   : > { %v3351_v63 = vadd.f32 %v1439_v0, %v1431_v35 }
 0xfd6   : > { %2801 = vtanh.f32 %v3349_v37 }
 0xfd7   : > { %2803 = vtanh.f32 %v3351_v63 }
 0xfd9   : > { %v2800_v21 = vpop.eup %2799 }
 0xfda   : > { %1304 = vrot.lane.b32.xlu0 %v2800_v21, %s2869_s30 }
 0xfe0   : > { %v2802_v3 = vpop.eup %2801 }
 0xfe1   : > { %v2804_v14 = vpop.eup %2803  ;;  %1376 = vrot.lane.b32.xlu1 %v2802_v3, %s2869_s30 }
 0xfe2   : > { %1444 = vrot.lane.b32.xlu0 %v2804_v14, %s2869_s30 }
0x104c   : > { %v1305_v25 = vpop.permute.xlu0 %1304 }
0x104d   : > { %v1307_v43 = vmul.f32 %v1305_v25, %v1290_v8 }
0x1053   : > { %v1377_v29 = vpop.permute.xlu1 %1376 }
0x1054   : > { %v1379_v44 = vmul.f32 %v1377_v29, %v1362_v11  ;;  %v1445_v46 = vpop.permute.xlu0 %1444 }
0x1055   : > { %v1447_v49 = vmul.f32 %v1445_v46, %v1430_v9 }
0x1056   : > { %v2713_v50 = vpack.i.bf16 %v1379_v44, %v1307_v43 }
0x1057   : > { %v2708_v51 = vpack.i.bf16 %v1447_v49, %v1379_v44  ;;  %v1593_v52 = vpack.c.bf16 %v1447_v49, %v1447_v49 }
0x1058   : > { %2714 = vrot.lane.b32.xlu0 %v2713_v50, %s2869_s30 }
0x1059   : > { %2709 = vrot.lane.b32.xlu1 %v2708_v51, %s2870_s4 }
0x105d   : > { %1596 = vrot.lane.b32.xlu1 %v1593_v52, %s2870_s4 }
0x10ca   : > { %v2715_v53 = vpop.permute.xlu0 %2714 }
0x10cb   : > { %v2717_v54 = vunpack.i.h.bf16 %v2715_v53  ;;  %v2716_v28 = vunpack.i.l.bf16 %v2715_v53  ;;  %v2710_v31 = vpop.permute.xlu1 %2709 }
0x10cc   : > { %v2712_v55 = vunpack.i.h.bf16 %v2710_v31  ;;  %v2711_v56 = vunpack.i.l.bf16 %v2710_v31 }
0x10ce   : > { %v1528_v58 = vsel %vm318_vm2, %v2712_v55, %v2717_v54  ;;  %v1456_v32 = vsel %vm318_vm2, %v2711_v56, %v2716_v28 }
0x10cf   : > { %v1529_v59 = vpack.c.bf16 %v1528_v58, %v1528_v58  ;;  %v1457_v60 = vpack.c.bf16 %v1456_v32, %v1456_v32  ;;  %v1597_v62 = vpop.permute.xlu1 %1596 }
0x10d1   : > { %2581 = vmatmul.mubr.msk.bf16.vlgmr.msra.gmra.mrb[32].mxu1 %vm432_vm3, %v1457_v60  ;;  %2593 = vmatmul.mubr.msk.bf16.vlgmr.msra.gmra.mrb[36].mxu0 %vm432_vm3, %v1529_v59 }
0x10d2   : > { %2597 = vmatpush3.bf16.msra.mxu1 %v3291_v15  ;;  %2600 = vmatprep.mubr.msk.bf16.mxu1 %vm2867_vm1, %v2866_v1 }
0x10d3   : > { %2598 = vmatprep.subr.bf16.mxu1 %v2866_v1  ;;  %2605 = vmatpush3.bf16.msra.mxu0 %v3053_v16  ;;  %v3381_v16 = vld [vmem:[%s3619_s1 + $0x18] sm:$0xff]  }
0x10d4   : > { %2606 = vmatprep.subr.bf16.mxu0 %v2866_v1  ;;  %2612 = vmatprep.mubr.msk.bf16.mxu0 %vm2867_vm1, %v2866_v1 }
0x10d6   : > { %2599 = vmatpush3.bf16.msra.mxu1 %v3301_v12 }
0x10d7   : > { %2607 = vmatpush3.bf16.msra.mxu0 %v3059_v17  ;;  %2616 = vmatprep.subr.bf16.mxu1 %v2866_v1  ;;  %v3392_v17 = vld [vmem:[%s3619_s1 + $0x20] sm:$0xff]  }
0x10d8   : > { %2608 = vmatprep.subr.bf16.mxu0 %v2866_v1 }
0x10d9   : > { %2601 = vmatmul.mubr.msk.bf16.vlgmr.msra.gmra.mrb[36].mxu1 %vm318_vm2, %v1597_v62 }
0x10da   : > { %2617 = vmatpush3.bf16.msra.mxu1 %v3381_v16  ;;  %2624 = vmatprep.mubr.msk.bf16.mxu1 %vm2867_vm1, %v2866_v1 }
0x10db   : > { %2609 = vmatpush3.bf16.msra.mxu0 %v3068_v22  ;;  %2618 = vmatprep.subr.bf16.mxu1 %v2866_v1  ;;  %v3401_v22 = vld [vmem:[%s3619_s1 + $0x28] sm:$0xff]  }
0x10dc   : > { %2610 = vmatprep.subr.bf16.mxu0 %v2866_v1 }
0x10de   : > { %2619 = vmatpush3.bf16.msra.mxu1 %v3392_v17 }
0x10df   : > { %2611 = vmatpush3.bf16.msra.mxu0 %v3076_v23  ;;  %2620 = vmatprep.subr.bf16.mxu1 %v2866_v1 }
0x10e0   : > { %2628 = vmatprep.subr.bf16.mxu0 %v2866_v1 }
0x10e2   : > { %2621 = vmatpush3.bf16.msra.mxu1 %v3401_v22 }
0x10e3   : > { %2622 = vmatprep.subr.bf16.mxu1 %v2866_v1 }
0x10e6   : > { %2623 = vmatpush3.bf16.msra.mxu1 %v3408_v36 }
0x10e7   : > { %2636 = vmatprep.subr.bf16.mxu1 %v2866_v1 }
0x11a4   : > { %v1495_v23 = vpop.f32.mrb[32].mxu1  ;;  %v1567_v34 = vpop.f32.mrb[36].mxu0 }
0x11a5   : > { %v1496_v2 = vadd.f32 %v3117_v48, %v1495_v23  ;;  %v1568_v4 = vadd.f32 %v3416_v39, %v1567_v34  ;;  %v2582_v42 = vpop.f32.mrb[33].mxu1  ;;  %v2594_v45 = vpop.f32.mrb[37].mxu0  ;;  %v287_v48 = vadd.f32 %v3422_v41, %v3004_v38  ;;  %v3436_v38 = vld [vmem:[%s3620_s2 + $0x7] ss:$0 sm:$0xff] }
0x11a6   : > { %v1498_v5 = vpop.f32.mrb[34].mxu1  ;;  %v1570_v6 = vpop.f32.mrb[38].mxu0 }
0x11a7   : > { %2805 = vtanh.f32 %v1496_v2  ;;  %v2583_v8 = vpop.f32.mrb[35].mxu1  ;;  %v2595_v7 = vpop.f32.mrb[39].mxu0 }
0x11a8   : > { %2807 = vtanh.f32 %v1568_v4 }
0x11ac   : > { %v1635_v47 = vpop.f32.mrb[36].mxu1 }
0x11ad   : > { %v1636_v10 = vadd.f32 %v1635_v47, %v287_v48  ;;  %v2602_v11 = vpop.f32.mrb[37].mxu1 }
0x11ae   : > { %v1638_v9 = vpop.f32.mrb[38].mxu1 }
0x11af   : > { %2809 = vtanh.f32 %v1636_v10  ;;  %v2603_v13 = vpop.f32.mrb[39].mxu1  ;;  %v290_v10 = vadd.f32 %v3422_v41, %v3008_v40 }
0x11b1   : > { %v2806_v19 = vpop.eup %2805 }
0x11b2   : > { %v2808_v24 = vpop.eup %2807  ;;  %v1502_v27 = vmul.f32 %v3429_v26, %v2806_v19 }
0x11b3   : > { %v1574_v57 = vmul.f32 %v3429_v26, %v2808_v24 }
0x11b4   : > { %v1503_v18 = vadd.f32 %v3436_v38, %v1502_v27 }
0x11b5   : > { %v1575_v30 = vadd.f32 %v3436_v38, %v1574_v57 }
0x11b6   : > { %1506 = vrot.lane.b32.xlu0 %v1503_v18, %s2869_s30  ;;  %v1504_v43 = vmul.f32 %v1503_v18, %v3344_v20 }
0x11b7   : > { %1578 = vrot.lane.b32.xlu1 %v1575_v30, %s2869_s30  ;;  %v1576_v46 = vmul.f32 %v1575_v30, %v3349_v37 }
0x11b9   : > { %v2810_v61 = vpop.eup %2809 }
0x11ba   : > { %v1642_v33 = vmul.f32 %v3429_v26, %v2810_v61 }
0x11bc   : > { %v1643_v35 = vadd.f32 %v3436_v38, %v1642_v33 }
0x11be   : > { %1646 = vrot.lane.b32.xlu0 %v1643_v35, %s2869_s30  ;;  %v1644_v52 = vmul.f32 %v1643_v35, %v3351_v63 }
0x1228   : > { %v1507_v0 = vpop.permute.xlu0 %1506 }
0x1229   : > { %v1579_v21 = vpop.permute.xlu1 %1578  ;;  %v1509_v3 = vmul.f32 %v1507_v0, %v1503_v18 }
0x122a   : > { %v1581_v14 = vmul.f32 %v1579_v21, %v1575_v30 }
0x122b   : > { %1511 = vrot.lane.b32.xlu1 %v1509_v3, %s2870_s4 }
0x122c   : > { %1583 = vrot.lane.b32.xlu0 %v1581_v14, %s2870_s4 }
0x1230   : > { %v1647_v25 = vpop.permute.xlu0 %1646 }
0x1231   : > { %v1649_v29 = vmul.f32 %v1647_v25, %v1643_v35 }
0x1233   : > { %1651 = vrot.lane.b32.xlu1 %v1649_v29, %s2870_s4 }
0x129d   : > { %v1512_v44 = vpop.permute.xlu1 %1511 }
0x129e   : > { %v3450_v49 = vadd.f32 %v1512_v44, %v1504_v43  ;;  %v1584_v50 = vpop.permute.xlu0 %1583 }
0x129f   : > { %v3452_v51 = vadd.f32 %v1584_v50, %v1576_v46 }
0x12a0   : > { %2811 = vtanh.f32 %v3450_v49 }
0x12a1   : > { %2813 = vtanh.f32 %v3452_v51 }
0x12a5   : > { %v1652_v53 = vpop.permute.xlu1 %1651 }
0x12a6   : > { %v3457_v54 = vadd.f32 %v1652_v53, %v1644_v52 }
0x12a8   : > { %2815 = vtanh.f32 %v3457_v54 }
0x12aa   : > { %v2812_v20 = vpop.eup %2811 }
0x12ab   : > { %v2814_v28 = vpop.eup %2813  ;;  %1517 = vrot.lane.b32.xlu0 %v2812_v20, %s2869_s30 }
0x12ac   : > { %1589 = vrot.lane.b32.xlu1 %v2814_v28, %s2869_s30 }
0x12b2   : > { %v2816_v37 = vpop.eup %2815 }
0x12b3   : > { %1657 = vrot.lane.b32.xlu0 %v2816_v37, %s2869_s30 }
0x131d   : > { %v1518_v31 = vpop.permute.xlu0 %1517 }
0x131e   : > { %v1590_v55 = vpop.permute.xlu1 %1589  ;;  %v1520_v56 = vmul.f32 %v1518_v31, %v1503_v18 }
0x131f   : > { %v1592_v58 = vmul.f32 %v1590_v55, %v1575_v30 }
0x1320   : > { %1666 = vrot.lane.b32.xlu0 %v1520_v56, %s2869_s30 }
0x1321   : > { %1662 = vrot.lane.b32.xlu1 %v1592_v58, %s2870_s4 }
0x1324   : > { %1738 = vrot.lane.b32.xlu0 %v1592_v58, %s2869_s30 }
0x1325   : > { %v1658_v63 = vpop.permute.xlu0 %1657 }
0x1326   : > { %v1660_v32 = vmul.f32 %v1658_v63, %v1643_v35 }
0x1328   : > { %1735 = vrot.lane.b32.xlu1 %v1660_v32, %s2870_s4  ;;  %v1806_v59 = vpack.c.bf16 %v1660_v32, %v1660_v32 }
0x132c   : > { %1809 = vrot.lane.b32.xlu1 %v1806_v59, %s2870_s4 }
0x1392   : > { %v1667_v60 = vpop.permute.xlu0 %1666 }
0x1393   : > { %v1663_v62 = vpop.permute.xlu1 %1662 }
0x1394   : > { %v1669_v23 = vsel %vm318_vm2, %v1663_v62, %v1667_v60 }
0x1395   : > { %v1670_v34 = vpack.c.bf16 %v1669_v23, %v1669_v23 }
0x1396   : > { %v1739_v2 = vpop.permute.xlu0 %1738 }
0x1397   : > { %2613 = vmatmul.mubr.msk.bf16.vlgmr.msra.gmra.mrb[40].mxu0 %vm432_vm3, %v1670_v34 }
0x1398   : > { %2629 = vmatpush3.bf16.msra.mxu0 %v3291_v15  ;;  %2632 = vmatprep.mubr.msk.bf16.mxu0 %vm2867_vm1, %v2866_v1  ;;  %v3482_v15 = vld [vmem:[%s3619_s1 + $0x38] sm:$0xff]  }
0x1399   : > { %2630 = vmatprep.subr.bf16.mxu0 %v2866_v1 }
0x139a   : > { %v1736_v4 = vpop.permute.xlu1 %1735 }
0x139b   : > { %v1741_v42 = vsel %vm318_vm2, %v1736_v4, %v1739_v2 }
0x139c   : > { %v1742_v45 = vpack.c.bf16 %v1741_v42, %v1741_v42  ;;  %2631 = vmatpush3.bf16.msra.mxu0 %v3301_v12  ;;  %v3495_v12 = vld [vmem:[%s3619_s1 + $0x40] sm:$0xff]  }
0x139d   : > { %2648 = vmatprep.subr.bf16.mxu0 %v2866_v1 }
0x139e   : > { %v1810_v5 = vpop.permute.xlu1 %1809  ;;  %2625 = vmatmul.mubr.msk.bf16.vlgmr.msra.gmra.mrb[40].mxu1 %vm432_vm3, %v1742_v45 }
0x139f   : > { %2633 = vmatmul.mubr.msk.bf16.vlgmr.msra.gmra.mrb[44].mxu0 %vm318_vm2, %v1810_v5  ;;  %2637 = vmatpush3.bf16.msra.mxu1 %v3482_v15 }
0x13a0   : > { %2649 = vmatpush3.bf16.msra.mxu0 %v3381_v16  ;;  %2638 = vmatprep.subr.bf16.mxu1 %v2866_v1  ;;  %v3504_v16 = vld [vmem:[%s3619_s1 + $0x48] sm:$0xff]  }
0x13a1   : > { %2650 = vmatprep.subr.bf16.mxu0 %v2866_v1  ;;  %2644 = vmatprep.mubr.msk.bf16.mxu1 %vm2867_vm1, %v2866_v1 }
0x13a2   : > { %2656 = vmatprep.mubr.msk.bf16.mxu0 %vm2867_vm1, %v2866_v1 }
0x13a3   : > { %2639 = vmatpush3.bf16.msra.mxu1 %v3495_v12 }
0x13a4   : > { %2651 = vmatpush3.bf16.msra.mxu0 %v3392_v17  ;;  %2640 = vmatprep.subr.bf16.mxu1 %v2866_v1  ;;  %v3513_v17 = vld [vmem:[%s3619_s1 + $0x50] sm:$0xff]  }
0x13a5   : > { %2652 = vmatprep.subr.bf16.mxu0 %v2866_v1 }
0x13a7   : > { %2641 = vmatpush3.bf16.msra.mxu1 %v3504_v16 }
0x13a8   : > { %2653 = vmatpush3.bf16.msra.mxu0 %v3401_v22  ;;  %2642 = vmatprep.subr.bf16.mxu1 %v2866_v1  ;;  %v3522_v22 = vld [vmem:[%s3620_s2 + $0x2] ss:$0 sm:$0xff] }
0x13a9   : > { %2654 = vmatprep.subr.bf16.mxu0 %v2866_v1 }
0x13ab   : > { %2643 = vmatpush3.bf16.msra.mxu1 %v3513_v17 }
0x13ac   : > { %2655 = vmatpush3.bf16.msra.mxu0 %v3408_v36  ;;  %2660 = vmatprep.subr.bf16.mxu1 %v2866_v1 }
0x13ad   : > { %2672 = vmatprep.subr.bf16.mxu0 %v2866_v1 }
0x146a   : > { %v1708_v6 = vpop.f32.mrb[40].mxu0 }
0x146b   : > { %v1709_v8 = vadd.f32 %v3522_v22, %v1708_v6  ;;  %v2614_v7 = vpop.f32.mrb[41].mxu0 }
0x146c   : > { %v1711_v48 = vpop.f32.mrb[42].mxu0 }
0x146d   : > { %2817 = vtanh.f32 %v1709_v8  ;;  %v2615_v47 = vpop.f32.mrb[43].mxu0 }
0x1471   : > { %v1780_v36 = vpop.f32.mrb[40].mxu1 }
0x1472   : > { %v1781_v11 = vadd.f32 %v3416_v39, %v1780_v36  ;;  %v2626_v9 = vpop.f32.mrb[41].mxu1  ;;  %v1848_v13 = vpop.f32.mrb[44].mxu0 }
0x1473   : > { %v1849_v19 = vadd.f32 %v1848_v13, %v290_v10  ;;  %v1783_v24 = vpop.f32.mrb[42].mxu1  ;;  %v2634_v27 = vpop.f32.mrb[45].mxu0 }
0x1474   : > { %2819 = vtanh.f32 %v1781_v11  ;;  %v2627_v57 = vpop.f32.mrb[43].mxu1  ;;  %v1851_v18 = vpop.f32.mrb[46].mxu0 }
0x1475   : > { %2821 = vtanh.f32 %v1849_v19  ;;  %v2635_v30 = vpop.f32.mrb[47].mxu0 }
0x1477   : > { %v2818_v61 = vpop.eup %2817 }
0x1478   : > { %v1715_v33 = vmul.f32 %v3429_v26, %v2818_v61 }
0x147a   : > { %v1716_v35 = vadd.f32 %v3436_v38, %v1715_v33 }
0x147c   : > { %1719 = vrot.lane.b32.xlu0 %v1716_v35, %s2869_s30  ;;  %v1717_v52 = vmul.f32 %v1716_v35, %v3450_v49 }
0x147e   : > { %v2820_v40 = vpop.eup %2819 }
0x147f   : > { %v2822_v41 = vpop.eup %2821  ;;  %v1787_v0 = vmul.f32 %v3429_v26, %v2820_v40 }
0x1480   : > { %v1855_v21 = vmul.f32 %v3429_v26, %v2822_v41 }
0x1481   : > { %v1788_v3 = vadd.f32 %v3436_v38, %v1787_v0 }
0x1482   : > { %v1856_v14 = vadd.f32 %v3436_v38, %v1855_v21 }
0x1483   : > { %1791 = vrot.lane.b32.xlu1 %v1788_v3, %s2869_s30  ;;  %v1789_v28 = vmul.f32 %v1788_v3, %v3452_v51 }
0x1484   : > { %1859 = vrot.lane.b32.xlu0 %v1856_v14, %s2869_s30  ;;  %v1857_v31 = vmul.f32 %v1856_v14, %v3457_v54 }
0x14ee   : > { %v1720_v25 = vpop.permute.xlu0 %1719 }
0x14ef   : > { %v1722_v29 = vmul.f32 %v1720_v25, %v1716_v35 }
0x14f1   : > { %1724 = vrot.lane.b32.xlu1 %v1722_v29, %s2870_s4 }
0x14f5   : > { %v1792_v43 = vpop.permute.xlu1 %1791 }
0x14f6   : > { %v1794_v44 = vmul.f32 %v1792_v43, %v1788_v3  ;;  %v1860_v46 = vpop.permute.xlu0 %1859 }
0x14f7   : > { %v1862_v50 = vmul.f32 %v1860_v46, %v1856_v14 }
0x14f8   : > { %1796 = vrot.lane.b32.xlu0 %v1794_v44, %s2870_s4 }
0x14f9   : > { %1864 = vrot.lane.b32.xlu1 %v1862_v50, %s2870_s4 }
0x1563   : > { %v1725_v53 = vpop.permute.xlu1 %1724 }
0x1564   : > { %v3541_v20 = vadd.f32 %v1725_v53, %v1717_v52 }
0x1566   : > { %2823 = vtanh.f32 %v3541_v20 }
0x156a   : > { %v1797_v37 = vpop.permute.xlu0 %1796 }
0x156b   : > { %v3546_v55 = vadd.f32 %v1797_v37, %v1789_v28  ;;  %v1865_v56 = vpop.permute.xlu1 %1864 }
0x156c   : > { %v1867_v58 = vadd.f32 %v1865_v56, %v1857_v31 }
0x156d   : > { %2825 = vtanh.f32 %v3546_v55 }
0x156e   : > { %2827 = vtanh.f32 %v1867_v58 }
0x1570   : > { %v2824_v63 = vpop.eup %2823 }
0x1571   : > { %1730 = vrot.lane.b32.xlu0 %v2824_v63, %s2869_s30 }
0x1577   : > { %v2826_v49 = vpop.eup %2825 }
0x1578   : > { %v2828_v32 = vpop.eup %2827  ;;  %1802 = vrot.lane.b32.xlu1 %v2826_v49, %s2869_s30 }
0x1579   : > { %1870 = vrot.lane.b32.xlu0 %v2828_v32, %s2869_s30 }
0x15e3   : > { %v1731_v51 = vpop.permute.xlu0 %1730 }
0x15e4   : > { %v1733_v60 = vmul.f32 %v1731_v51, %v1716_v35 }
0x15ea   : > { %v1803_v59 = vpop.permute.xlu1 %1802 }
0x15eb   : > { %v1805_v54 = vmul.f32 %v1803_v59, %v1788_v3  ;;  %v1871_v62 = vpop.permute.xlu0 %1870 }
0x15ec   : > { %v1873_v23 = vmul.f32 %v1871_v62, %v1856_v14 }
0x15ed   : > { %v2723_v34 = vpack.i.bf16 %v1805_v54, %v1733_v60 }
0x15ee   : > { %v2718_v2 = vpack.i.bf16 %v1873_v23, %v1805_v54 }
0x15ef   : > { %2724 = vrot.lane.b32.xlu0 %v2723_v34, %s2869_s30 }
0x15f0   : > { %2719 = vrot.lane.b32.xlu1 %v2718_v2, %s2870_s4 }
0x1661   : > { %v2725_v4 = vpop.permute.xlu0 %2724 }
0x1662   : > { %v2727_v42 = vunpack.i.h.bf16 %v2725_v4  ;;  %v2726_v45 = vunpack.i.l.bf16 %v2725_v4  ;;  %v2720_v5 = vpop.permute.xlu1 %2719 }
0x1663   : > { %v2722_v6 = vunpack.i.h.bf16 %v2720_v5  ;;  %v2721_v8 = vunpack.i.l.bf16 %v2720_v5  ;;  %v2285_v5 = vld [vmem:[%s3620_s2 + $0x3] ss:$0 sm:$0xff] }
0x1665   : > { %v1954_v7 = vsel %vm318_vm2, %v2722_v6, %v2727_v42  ;;  %v1882_v48 = vsel %vm318_vm2, %v2721_v8, %v2726_v45 }
0x1666   : > { %v1955_v47 = vpack.c.bf16 %v1954_v7, %v1954_v7  ;;  %v1883_v10 = vpack.c.bf16 %v1882_v48, %v1882_v48 }
0x1668   : > { %2645 = vmatmul.mubr.msk.bf16.vlgmr.msra.gmra.mrb[44].mxu1 %vm432_vm3, %v1883_v10  ;;  %2657 = vmatmul.mubr.msk.bf16.vlgmr.msra.gmra.mrb[48].mxu0 %vm432_vm3, %v1955_v47  ;;  %v2289_v47 = vld [vmem:[%s3620_s2 + $0x4] ss:$0 sm:$0xff] }
0x1669   : > { %2661 = vmatpush3.bf16.msra.mxu1 %v3482_v15  ;;  %2668 = vmatprep.mubr.msk.bf16.mxu1 %vm2867_vm1, %v2866_v1 }
0x166a   : > { %2662 = vmatprep.subr.bf16.mxu1 %v2866_v1  ;;  %2676 = vmatprep.mubr.msk.bf16.mxu0 %vm2867_vm1, %v2866_v1 }
0x166d   : > { %2663 = vmatpush3.bf16.msra.mxu1 %v3495_v12 }
0x166e   : > { %2664 = vmatprep.subr.bf16.mxu1 %v2866_v1 }
0x1671   : > { %2665 = vmatpush3.bf16.msra.mxu1 %v3504_v16 }
0x1672   : > { %2666 = vmatprep.subr.bf16.mxu1 %v2866_v1 }
0x1675   : > { %2667 = vmatpush3.bf16.msra.mxu1 %v3513_v17 }
0x173b   : > { %v1921_v36 = vpop.f32.mrb[44].mxu1  ;;  %v1993_v15 = vpop.f32.mrb[48].mxu0 }
0x173c   : > { %v1922_v11 = vadd.f32 %v3522_v22, %v1921_v36  ;;  %v1994_v9 = vadd.f32 %v3416_v39, %v1993_v15  ;;  %v2646_v13 = vpop.f32.mrb[45].mxu1  ;;  %v2658_v19 = vpop.f32.mrb[49].mxu0  ;;  %v2290_v15 = vld [vmem:[%s3620_s2 + $0x5] ss:$0 sm:$0xff] }
0x173d   : > { %v1924_v24 = vpop.f32.mrb[46].mxu1  ;;  %v1996_v27 = vpop.f32.mrb[50].mxu0 }
0x173e   : > { %2829 = vtanh.f32 %v1922_v11  ;;  %v2647_v12 = vpop.f32.mrb[47].mxu1  ;;  %v2659_v57 = vpop.f32.mrb[51].mxu0 }
0x173f   : > { %2831 = vtanh.f32 %v1994_v9 }
0x1748   : > { %v2830_v18 = vpop.eup %2829 }
0x1749   : > { %v2832_v16 = vpop.eup %2831  ;;  %v1928_v30 = vmul.f32 %v3429_v26, %v2830_v18 }
0x174a   : > { %v2000_v17 = vmul.f32 %v3429_v26, %v2832_v16 }
0x174b   : > { %v1929_v61 = vadd.f32 %v3436_v38, %v1928_v30 }
0x174c   : > { %v2001_v33 = vadd.f32 %v3436_v38, %v2000_v17 }
0x174d   : > { %1932 = vrot.lane.b32.xlu1 %v1929_v61, %s2869_s30  ;;  %v1930_v0 = vmul.f32 %v1929_v61, %v3541_v20 }
0x174e   : > { %2004 = vrot.lane.b32.xlu0 %v2001_v33, %s2869_s30  ;;  %v2002_v21 = vmul.f32 %v2001_v33, %v3546_v55 }
0x17bf   : > { %v1933_v39 = vpop.permute.xlu1 %1932 }
0x17c0   : > { %v2005_v35 = vpop.permute.xlu0 %2004  ;;  %v1935_v40 = vmul.f32 %v1933_v39, %v1929_v61 }
0x17c1   : > { %v2007_v41 = vmul.f32 %v2005_v35, %v2001_v33 }
0x17c2   : > { %1937 = vrot.lane.b32.xlu1 %v1935_v40, %s2870_s4 }
0x17c3   : > { %2009 = vrot.lane.b32.xlu0 %v2007_v41, %s2870_s4 }
0x1834   : > { %v1938_v3 = vpop.permute.xlu1 %1937 }
0x1835   : > { %v2010_v14 = vpop.permute.xlu0 %2009  ;;  %v1940_v25 = vadd.f32 %v1938_v3, %v1930_v0 }
0x1836   : > { %v2012_v29 = vadd.f32 %v2010_v14, %v2002_v21 }
0x1837   : > { %2833 = vtanh.f32 %v1940_v25 }
0x1838   : > { %2835 = vtanh.f32 %v2012_v29 }
0x1841   : > { %v2834_v43 = vpop.eup %2833 }
0x1842   : > { %v2836_v44 = vpop.eup %2835  ;;  %1943 = vrot.lane.b32.xlu1 %v2834_v43, %s2869_s30 }
0x1843   : > { %2015 = vrot.lane.b32.xlu0 %v2836_v44, %s2869_s30 }
0x18b4   : > { %v1944_v46 = vpop.permute.xlu1 %1943 }
0x18b5   : > { %v2016_v50 = vpop.permute.xlu0 %2015  ;;  %v1946_v52 = vmul.f32 %v1944_v46, %v1929_v61 }
0x18b6   : > { %v2018_v53 = vmul.f32 %v2016_v50, %v2001_v33 }
0x18b7   : > { %2024 = vrot.lane.b32.xlu0 %v1946_v52, %s2869_s30 }
0x18b8   : > { %2020 = vrot.lane.b32.xlu1 %v2018_v53, %s2870_s4 }
0x1929   : > { %v2025_v20 = vpop.permute.xlu0 %2024 }
0x192a   : > { %v2021_v28 = vpop.permute.xlu1 %2020 }
0x192b   : > { %v2027_v37 = vsel %vm318_vm2, %v2021_v28, %v2025_v20 }
0x192c   : > { %v2028_v31 = vpack.c.bf16 %v2027_v37, %v2027_v37 }
0x192e   : > { %2669 = vmatmul.mubr.msk.bf16.vlgmr.msra.gmra.mrb[48].mxu1 %vm432_vm3, %v2028_v31 }
0x1a01   : > { %v2066_v55 = vpop.f32.mrb[48].mxu1 }
0x1a02   : > { %v2067_v56 = vadd.f32 %v3522_v22, %v2066_v55  ;;  %v2670_v58 = vpop.f32.mrb[49].mxu1  ;;  %v2743_v22 = vld [vmem:[%s3619_s1 + $0x58] sm:$0xff]  }
0x1a03   : > { %v2069_v63 = vpop.f32.mrb[50].mxu1  ;;  %2673 = vmatpush3.bf16.msra.mxu0 %v2743_v22 }
0x1a04   : > { %2837 = vtanh.f32 %v2067_v56  ;;  %v2671_v49 = vpop.f32.mrb[51].mxu1  ;;  %2674 = vmatprep.subr.bf16.mxu0 %v2866_v1 }
0x1a0e   : > { %v2838_v32 = vpop.eup %2837 }
0x1a0f   : > { %v2073_v51 = vmul.f32 %v3429_v26, %v2838_v32  ;;  %v2744_v26 = vld [vmem:[%s3619_s1 + $0x60] sm:$0xff]  }
0x1a10   : > { %2675 = vmatpush3.bf16.msra.mxu0 %v2744_v26 }
0x1a11   : > { %v2074_v59 = vadd.f32 %v3436_v38, %v2073_v51 }
0x1a13   : > { %2077 = vrot.lane.b32.xlu1 %v2074_v59, %s2869_s30  ;;  %v2075_v62 = vmul.f32 %v2074_v59, %v1940_v25 }
0x1a85   : > { %v2078_v60 = vpop.permute.xlu1 %2077 }
0x1a86   : > { %v2080_v54 = vmul.f32 %v2078_v60, %v2074_v59 }
0x1a88   : > { %2082 = vrot.lane.b32.xlu0 %v2080_v54, %s2870_s4 }
0x1afa   : > { %v2083_v23 = vpop.permute.xlu0 %2082 }
0x1afb   : > { %v2085_v34 = vadd.f32 %v2083_v23, %v2075_v62 }
0x1afd   : > { %2839 = vtanh.f32 %v2085_v34 }
0x1b07   : > { %v2840_v38 = vpop.eup %2839 }
0x1b08   : > { %2088 = vrot.lane.b32.xlu1 %v2840_v38, %s2869_s30 }
0x1b7a   : > { %v2089_v2 = vpop.permute.xlu1 %2088 }
0x1b7b   : > { %v2091_v4 = vmul.f32 %v2089_v2, %v2074_v59 }
0x1b7d   : > { %v2092_v42 = vpack.c.bf16 %v2091_v4, %v2091_v4 }
0x1b7f   : > { %2103 = vrot.lane.b32.xlu0 %v2092_v42, %s2870_s4  ;;  %s2237_s4 = sshll.u32 %s3623_s13, 3 }
0x1b80   : > { %s168_s22 = scalar_lea.vmem %s3621_s3, %s2237_s4 }
0x1bf1   : > { %v2104_v45 = vpop.permute.xlu0 %2103 }
0x1bf2   : > { %2677 = vmatmul.mubr.msk.bf16.vlgmr.msra.gmra.mrb[52].mxu0 %vm318_vm2, %v2104_v45 }
0x1cc5   : > { %v2154_v6 = vpop.f32.mrb[52].mxu0 }
0x1cc6   : > { %v2155_v8 = vadd.f32 %v2285_v5, %v2154_v6  ;;  %v2678_v1 = vpop.f32.mrb[53].mxu0 }
0x1cc7   : > { %v2157_v7 = vpop.f32.mrb[54].mxu0 }
0x1cc8   : > { %2841 = vtanh.f32 %v2155_v8  ;;  %v2679_v48 = vpop.f32.mrb[55].mxu0 }
0x1cd2   : > { %v2842_v10 = vpop.eup %2841 }
0x1cd3   : > { %v2167_v36 = vmul.f32 %v2842_v10, %v2289_v47 }
0x1cd5   : > { %2168 = vadd.xlane.f32.xlu1 %v2167_v36 }
0x1d62   : > { %v2169_v11 = vpop.xlane.xlu1 %2168 }
0x1d63   : > { %v2174_v9 = vadd.f32 %v2290_v15, %v2169_v11 }
0x1d65   : > { %2176 = vst.msk [vmem:[%s168_s22] sm:$0xff] %vm2175_vm4, %v2174_v9 }
0x1d66 PF: > { %s13_s12 = sadd.s32 1, %s2864_s12  }
0x1d67   : > { %p10_p4 = scmp.ge.s32.totalorder %s13_s12, 4  }
0x1d69   :  { %12 = sbr.rel (!%p10_p4) target bundleno = 1 (0x1), region = 62 }

</bundles_post_ra>
